<compile_context>
chip_gen: v5e
topology: v5e:2x2
jax: 0.10.0
libtpu: 0.0.40
codegen_flags: <defaults>
</compile_context>

<pallas_src>
import jax
import jax.numpy as jnp
from jax.experimental import pallas as pl
from jax.experimental.pallas import tpu as pltpu


def _se_gate_conv1x1_kernel(gate_ref, x_ref, w_ref, o_ref):
    # gate_ref: [1, Cin]    pre-sigmoid SE gate for this batch element
    # x_ref:    [Cin, HW]   channel-major activations for this batch element
    # w_ref:    [Cout, Cin] 1x1 conv weight (weight-stationary LHS of the MXU)
    # o_ref:    [Cout, HW]
    gate = jax.nn.sigmoid(gate_ref[...])                    # EUP, f32, [1, Cin]
    # Fold gate into the weight: [1, Cin] row broadcast over Cout rows (VPU,
    # hidden under MXU/DMA slack).  Then cast operands to bf16 for the MXU.
    gated_w = (w_ref[...] * gate).astype(jnp.bfloat16)      # [Cout, Cin]
    x = x_ref[...].astype(jnp.bfloat16)                     # [Cin, HW]
    o_ref[...] = jnp.dot(
        gated_w, x, preferred_element_type=jnp.float32
    ).astype(o_ref.dtype)


def se_gated_conv1x1(x_nchw, gate_nc11, weight_oi):
    """x_nchw: [N, Cin, H, W], gate_nc11: [N, Cin, 1, 1], weight_oi: [Cout, Cin]."""
    N, Cin, H, W = x_nchw.shape
    Cout, Cin_w = weight_oi.shape
    assert Cin_w == Cin
    assert gate_nc11.shape == (N, Cin, 1, 1)
    HW = H * W

    # Free layout changes (no transposes): NCHW is already channel-major.
    x3d = x_nchw.reshape(N, Cin, HW)
    gate3d = gate_nc11.reshape(N, 1, Cin)

    cost = pl.CostEstimate(
        flops=2 * N * Cout * Cin * HW + N * Cout * Cin,
        transcendentals=N * Cin,
        bytes_accessed=4 * (N * Cin * HW + Cout * Cin + N * Cin + N * Cout * HW),
    )

    out3d = pl.pallas_call(
        _se_gate_conv1x1_kernel,
        out_shape=jax.ShapeDtypeStruct((N, Cout, HW), x_nchw.dtype),
        grid=(N,),
        in_specs=[
            pl.BlockSpec((None, 1, Cin), lambda n: (n, 0, 0)),    # gate (per batch)
            pl.BlockSpec((None, Cin, HW), lambda n: (n, 0, 0)),   # x    (per batch)
            pl.BlockSpec((Cout, Cin), lambda n: (0, 0)),          # weight (shared)
        ],
        out_specs=pl.BlockSpec((None, Cout, HW), lambda n: (n, 0, 0)),
        compiler_params=pltpu.CompilerParams(
            dimension_semantics=("parallel",),
        ),
        cost_estimate=cost,
    )(gate3d, x3d, weight_oi)

    # [N, Cout, HW] -> NCHW is a free reshape.
    return out3d.reshape(N, Cout, H, W)


if __name__ == "__main__":
    key = jax.random.PRNGKey(0)
    k1, k2, k3 = jax.random.split(key, 3)

    # Shapes from the original module (already small).
    N, Cin, H, W = 1, 1152, 7, 7
    Cout = 192

    x181 = jax.random.normal(k1, (N, Cin, H, W), dtype=jnp.float32)
    x185 = jax.random.normal(k2, (N, Cin, 1, 1), dtype=jnp.float32)
    # Deterministic 1x1 conv weight, [Cout, Cin], kaiming-ish scale.
    weight = jax.random.normal(k3, (Cout, Cin), dtype=jnp.float32) * (Cin ** -0.5)

    fn = jax.jit(se_gated_conv1x1)
    out = jax.block_until_ready(fn(x181, x185, weight))

    # Pure-JAX reference of the PyTorch forward.
    ref = jnp.einsum("nchw,oc->nohw", x181 * jax.nn.sigmoid(x185), weight)
    assert out.shape == (N, Cout, H, W)
    # bf16 MXU operands with f32 accumulation -> loosened tolerance.
    assert jnp.allclose(out, ref, atol=3e-2, rtol=3e-2), float(
        jnp.max(jnp.abs(out - ref))
    )

    # Extra check: batch > 1 path (grid over N, "parallel" axis).
    N2 = 2
    xb = jax.random.normal(k1, (N2, Cin, H, W), dtype=jnp.float32)
    gb = jax.random.normal(k2, (N2, Cin, 1, 1), dtype=jnp.float32)
    outb = jax.block_until_ready(fn(xb, gb, weight))
    refb = jnp.einsum("nchw,oc->nohw", xb * jax.nn.sigmoid(gb), weight)
    assert jnp.allclose(outb, refb, atol=3e-2, rtol=3e-2)

    print("KERNEL_OK")
</pallas_src>

<mosaic_0001>
module attributes {stable_mosaic.version = 11 : i64} {
  func.func @_se_gate_conv1x1_kernel(%arg0: i32, %arg1: memref<1x1x1152xf32, #tpu.memory_space<vmem>>, %arg2: memref<1x1152x49xf32, #tpu.memory_space<vmem>>, %arg3: memref<192x1152xf32, #tpu.memory_space<vmem>>, %arg4: memref<1x192x49xf32, #tpu.memory_space<vmem>>) attributes {dimension_semantics = [#tpu.dimension_semantics<parallel>], iteration_bounds = array<i64: 1>, scalar_prefetch = 0 : i64, scratch_operands = 0 : i64, tpu.core_type = #tpu.core_type<tc>, window_params = [{transform_indices = @transform_0, window_bounds = array<i64: 1, 1, 1152>}, {transform_indices = @transform_1, window_bounds = array<i64: 1, 1152, 49>}, {pipeline_mode = #tpu.pipeline_mode<synchronous>, transform_indices = @transform_2, window_bounds = array<i64: 192, 1152>}, {transform_indices = @transform_3, window_bounds = array<i64: 1, 192, 49>}]} {
    %c0 = arith.constant 0 : index
    %c0_0 = arith.constant 0 : index
    %c0_1 = arith.constant 0 : index
    %0 = vector.load %arg1[%c0, %c0_0, %c0_1] : memref<1x1x1152xf32, #tpu.memory_space<vmem>>, vector<1x1x1152xf32>
    %1 = vector.shape_cast %0 : vector<1x1x1152xf32> to vector<1x1152xf32>
    %2 = arith.negf %1 : vector<1x1152xf32>
    %3 = math.exp %2 : vector<1x1152xf32>
    %cst = arith.constant 1.000000e+00 : f32
    %4 = vector.broadcast %cst : f32 to vector<1x1152xf32>
    %5 = arith.addf %4, %3 : vector<1x1152xf32>
    %6 = arith.divf %4, %5 : vector<1x1152xf32>
    %c0_2 = arith.constant 0 : index
    %c0_3 = arith.constant 0 : index
    %7 = vector.load %arg3[%c0_2, %c0_3] : memref<192x1152xf32, #tpu.memory_space<vmem>>, vector<192x1152xf32>
    %8 = vector.broadcast %6 : vector<1x1152xf32> to vector<192x1152xf32>
    %9 = arith.mulf %7, %8 : vector<192x1152xf32>
    %10 = arith.truncf %9 : vector<192x1152xf32> to vector<192x1152xbf16>
    %c0_4 = arith.constant 0 : index
    %c0_5 = arith.constant 0 : index
    %c0_6 = arith.constant 0 : index
    %11 = vector.load %arg2[%c0_4, %c0_5, %c0_6] : memref<1x1152x49xf32, #tpu.memory_space<vmem>>, vector<1x1152x49xf32>
    %12 = vector.shape_cast %11 : vector<1x1152x49xf32> to vector<1152x49xf32>
    %13 = arith.truncf %12 : vector<1152x49xf32> to vector<1152x49xbf16>
    %cst_7 = arith.constant dense<0.000000e+00> : vector<192x49xf32>
    %14 = tpu.matmul %10, %13, %cst_7 {dimension_numbers = #tpu.dot_dimension_numbers<[1], [0], [0], [1], [0, 0, 1, 1], [], []>} : vector<192x1152xbf16>, vector<1152x49xbf16>, vector<192x49xf32> -> vector<192x49xf32>
    %c0_8 = arith.constant 0 : index
    %c0_9 = arith.constant 0 : index
    %c0_10 = arith.constant 0 : index
    %15 = vector.load %arg4[%c0_8, %c0_9, %c0_10] : memref<1x192x49xf32, #tpu.memory_space<vmem>>, vector<1x192x49xf32>
    %16 = vector.shape_cast %15 : vector<1x192x49xf32> to vector<192x49xf32>
    %17 = vector.shape_cast %14 : vector<192x49xf32> to vector<1x192x49xf32>
    tpu.vector_store %arg4[%c0_8, %c0_9, %c0_10], %17 {strides = array<i32>} : memref<1x192x49xf32, #tpu.memory_space<vmem>>, vector<1x192x49xf32>,
    return
  }
  func.func @transform_0(%arg0: i32) -> (i32, i32, i32) {
    %c0_i32 = arith.constant 0 : i32
    %c0_i32_0 = arith.constant 0 : i32
    %c0_i32_1 = arith.constant 0 : i32
    return %arg0, %c0_i32, %c0_i32_0 : i32, i32, i32
  }
  func.func @transform_1(%arg0: i32) -> (i32, i32, i32) {
    %c0_i32 = arith.constant 0 : i32
    %c0_i32_0 = arith.constant 0 : i32
    %c0_i32_1 = arith.constant 0 : i32
    return %arg0, %c0_i32, %c0_i32_0 : i32, i32, i32
  }
  func.func @transform_2(%arg0: i32) -> (i32, i32) {
    %c0_i32 = arith.constant 0 : i32
    %c0_i32_0 = arith.constant 0 : i32
    %c0_i32_1 = arith.constant 0 : i32
    return %c0_i32, %c0_i32_0 : i32, i32
  }
  func.func @transform_3(%arg0: i32) -> (i32, i32, i32) {
    %c0_i32 = arith.constant 0 : i32
    %c0_i32_0 = arith.constant 0 : i32
    %c0_i32_1 = arith.constant 0 : i32
    return %arg0, %c0_i32, %c0_i32_0 : i32, i32, i32
  }
}

</mosaic_0001>

<bundles_post_ra>
// kernel: se_gated_conv1x1.1
= control target key start
LH: loop header
LB: loop body
LE: loop exit
PB: predicated region body
PF: predicated region fallthrough
CT: control target
= control target key end

     0   :  { %8 = vsyncpa [#allocation3], 0  ;;  %s1560_s15 = smov [#allocation2]   ;;  %s1561_s17 = smov 1152   ;;  %s2541_s0 = inlined_call_operand.vmem [shape: f32[1,1,1152], index: 0, kind: input, shape index: {}]   ;;  %s2542_s1 = inlined_call_operand.vmem [shape: f32[1,1152,49], index: 1, kind: input, shape index: {}]   ;;  %s2543_s2 = inlined_call_operand.hbm [shape: f32[192,1152], index: 2, kind: input, shape index: {}]   ;;  %s2544_s3 = inlined_call_operand.vmem [shape: f32[1,192,49], index: 3, kind: output, shape index: {}]  }
   0x1   :  { %s17_s14 = sshll.u32 %s2543_s2, 4  ;;  %s19_s16 = sshll.u32 %s1560_s15, 4  ;;  %s18_s14 = int_to_ptr.hbm [resolvable:$true] %s17_s14  ;;  %s20_s16 = int_to_ptr.vmem [resolvable:$true] %s19_s16 }
   0x2   :  { %s1562_s18 = smov 72  }
   0x3   :  { %25 = dma.hbm_to_vmem [thread:$0]  %s18_s14, 27648, %s20_s16, [#allocation3], %s1561_s17, %s1561_s17, %s1562_s18  }
   0x4   :  { %1558 = dma.done.wait [#allocation3], 27648  }
   0x5   :  { %1559 = vsyncadd [#allocation3], 4294939648  ;;  %v644_v0 = vld [vmem:[%s2542_s1 + $0x70] sm:$0xff]  ;;  %v645_v1 = vld [vmem:[%s2542_s1 + $0x78] sm:$0xff]  ;;  %vm1467_vm8 = vcmask 400384  }
   0x6   :  { %v642_v2 = vld [vmem:[%s2542_s1 + $0x60] sm:$0xff]  ;;  %v781_v3 = vpack.c.bf16 %v645_v1, %v644_v0  ;;  %v643_v4 = vld [vmem:[%s2542_s1 + $0x68] sm:$0xff]  ;;  %v640_v6 = vld [vmem:[%s2542_s1 + $0x50] sm:$0xff] }
   0x7   :  { %v780_v5 = vpack.c.bf16 %v643_v4, %v642_v2  ;;  %v641_v7 = vld [vmem:[%s2542_s1 + $0x58] sm:$0xff]  ;;  %v30_v8 = vld [vmem:[%s2541_s0] sm:$0xff]  ;;  %v639_v12 = vld [vmem:[%s2542_s1 + $0x48] sm:$0xff] }
   0x8   :  { %1499 = vmatpush.bf16.msra.mxu1 %v781_v3  ;;  %1500 = vmatpush.bf16.msra.mxu2 %v781_v3  ;;  %v1497_v9 = vmul.f32 -1.442695, %v30_v8  ;;  %v779_v10 = vpack.c.bf16 %v641_v7, %v640_v6  ;;  %v638_v11 = vld [vmem:[%s2542_s1 + $0x40] sm:$0xff]  ;;  %v636_v14 = vld [vmem:[%s2542_s1 + $0x30] sm:$0xff]  ;;  %v637_v15 = vld [vmem:[%s2542_s1 + $0x38] sm:$0xff] }
   0x9   :  { %1501 = vmatpush.bf16.msra.mxu3 %v781_v3  ;;  %846 = vmatpush.bf16.msra.mxu0 %v781_v3  ;;  %v778_v13 = vpack.c.bf16 %v639_v12, %v638_v11  ;;  %v777_v17 = vpack.c.bf16 %v637_v15, %v636_v14  ;;  %v634_v19 = vld [vmem:[%s2542_s1 + $0x20] sm:$0xff]  ;;  %v635_v20 = vld [vmem:[%s2542_s1 + $0x28] sm:$0xff]  ;;  %v632_v22 = vld [vmem:[%s2542_s1 + $0x10] sm:$0xff] }
   0xa   :  { %1526 = vpow2.f32 %v1497_v9  ;;  %v776_v21 = vpack.c.bf16 %v635_v20, %v634_v19  ;;  %v633_v23 = vld [vmem:[%s2542_s1 + $0x18] sm:$0xff]  ;;  %v630_v26 = vld [vmem:[%s2542_s1] sm:$0xff]  ;;  %v631_v27 = vld [vmem:[%s2542_s1 + $0x8] sm:$0xff] }
   0xb   :  { %v775_v25 = vpack.c.bf16 %v633_v23, %v632_v22  ;;  %v676_v30 = vld [vmem:[%s2542_s1 + $0x170] sm:$0xff]  ;;  %v677_v31 = vld [vmem:[%s2542_s1 + $0x178] sm:$0xff]  ;;  %v774_v37 = vpack.c.bf16 %v631_v27, %v630_v26  ;;  %v674_v46 = vld [vmem:[%s2542_s1 + $0x160] sm:$0xff] }
   0xc   :  { %1502 = vmatpush.bf16.msra.mxu1 %v780_v5  ;;  %1503 = vmatpush.bf16.msra.mxu2 %v780_v5  ;;  %v692_v34 = vld [vmem:[%s2542_s1 + $0x1f0] sm:$0xff]  ;;  %v693_v35 = vld [vmem:[%s2542_s1 + $0x1f8] sm:$0xff]  ;;  %v797_v44 = vpack.c.bf16 %v677_v31, %v676_v30  ;;  %v675_v50 = vld [vmem:[%s2542_s1 + $0x168] sm:$0xff] }
   0xd   :  { %1504 = vmatpush.bf16.msra.mxu3 %v780_v5  ;;  %847 = vmatpush.bf16.msra.mxu0 %v780_v5  ;;  %v660_v36 = vld [vmem:[%s2542_s1 + $0xf0] sm:$0xff]  ;;  %v661_v38 = vld [vmem:[%s2542_s1 + $0xf8] sm:$0xff]  ;;  %v805_v45 = vpack.c.bf16 %v693_v35, %v692_v34  ;;  %v690_v51 = vld [vmem:[%s2542_s1 + $0x1e0] sm:$0xff]  ;;  %v796_v3 = vpack.c.bf16 %v675_v50, %v674_v46 }
   0xe   :  { %v708_v39 = vld [vmem:[%s2542_s1 + $0x270] sm:$0xff]  ;;  %v709_v40 = vld [vmem:[%s2542_s1 + $0x278] sm:$0xff]  ;;  %v789_v49 = vpack.c.bf16 %v661_v38, %v660_v36  ;;  %v691_v52 = vld [vmem:[%s2542_s1 + $0x1e8] sm:$0xff] }
   0xf   :  { %v813_v53 = vpack.c.bf16 %v709_v40, %v708_v39  ;;  %v124_v54 = vld [vmem:[#allocation2 + $0x1b0] sm:$0xff]  ;;  %v133_v55 = vld [vmem:[#allocation2 + $0x1f8] sm:$0xff]  ;;  %v658_v56 = vld [vmem:[%s2542_s1 + $0xe0] sm:$0xff]  ;;  %v804_v8 = vpack.c.bf16 %v691_v52, %v690_v51 }
  0x10   :  { %1505 = vmatpush.bf16.msra.mxu1 %v779_v10  ;;  %1506 = vmatpush.bf16.msra.mxu2 %v779_v10  ;;  %v1527_v16 = vpop.eup %1526  ;;  %v659_v57 = vld [vmem:[%s2542_s1 + $0xe8] sm:$0xff]  ;;  %v672_v58 = vld [vmem:[%s2542_s1 + $0x150] sm:$0xff]  ;;  %v673_v60 = vld [vmem:[%s2542_s1 + $0x158] sm:$0xff] }
  0x11   :  { %1507 = vmatpush.bf16.msra.mxu3 %v779_v10  ;;  %848 = vmatpush.bf16.msra.mxu0 %v779_v10  ;;  %v38_v18 = vadd.f32 1.0, %v1527_v16  ;;  %v706_v61 = vld [vmem:[%s2542_s1 + $0x260] sm:$0xff]  ;;  %v707_v62 = vld [vmem:[%s2542_s1 + $0x268] sm:$0xff]  ;;  %v232_v2 = vld [vmem:[#allocation2 + $0x510] sm:$0xff]  ;;  %v788_v9 = vpack.c.bf16 %v659_v57, %v658_v56  ;;  %v795_v10 = vpack.c.bf16 %v673_v60, %v672_v58 }
  0x12   :  { %v178_v0 = vld [vmem:[#allocation2 + $0x360] sm:$0xff]  ;;  %v187_v1 = vld [vmem:[#allocation2 + $0x3a8] sm:$0xff]  ;;  %v241_v5 = vld [vmem:[#allocation2 + $0x558] sm:$0xff]  ;;  %v812_v14 = vpack.c.bf16 %v707_v62, %v706_v61 }
  0x13   :  { %1528 = vrcp.f32 %v38_v18  ;;  %v51_v29 = vand.u32 2147483648, %v38_v18  ;;  %vm45_vm0 = vweird.f32 %v38_v18  ;;  %v49_v33 = vand.u32 2147483647, %v38_v18  ;;  %v70_v6 = vld [vmem:[#allocation2] sm:$0xff]  ;;  %v79_v7 = vld [vmem:[#allocation2 + $0x48] sm:$0xff]  ;;  %v688_v11 = vld [vmem:[%s2542_s1 + $0x1d0] sm:$0xff] }
  0x14   :  { %1508 = vmatpush.bf16.msra.mxu1 %v778_v13  ;;  %1509 = vmatpush.bf16.msra.mxu2 %v778_v13  ;;  %v689_v12 = vld [vmem:[%s2542_s1 + $0x1d8] sm:$0xff]  ;;  %v704_v20 = vld [vmem:[%s2542_s1 + $0x250] sm:$0xff]  ;;  %v671_v30 = vld [vmem:[%s2542_s1 + $0x148] sm:$0xff] }
  0x15   :  { %1510 = vmatpush.bf16.msra.mxu3 %v778_v13  ;;  %849 = vmatpush.bf16.msra.mxu0 %v778_v13  ;;  %v52_v43 = vor.u32 1.1754944e-38, %v51_v29  ;;  %vm1669_vm3 = vcmp.eq.f32.partialorder %v49_v33, 8.507059e+37  ;;  %v656_v13 = vld [vmem:[%s2542_s1 + $0xd0] sm:$0xff]  ;;  %v657_v19 = vld [vmem:[%s2542_s1 + $0xd8] sm:$0xff]  ;;  %v670_v29 = vld [vmem:[%s2542_s1 + $0x140] sm:$0xff] }
  0x16   :  { %v787_v33 = vpack.c.bf16 %v657_v19, %v656_v13  ;;  %v686_v34 = vld [vmem:[%s2542_s1 + $0x1c0] sm:$0xff]  ;;  %v687_v35 = vld [vmem:[%s2542_s1 + $0x1c8] sm:$0xff]  ;;  %v205_v48 = vld [vmem:[#allocation2 + $0x438] sm:$0xff] }
  0x17   :  { %v654_v36 = vld [vmem:[%s2542_s1 + $0xc0] sm:$0xff]  ;;  %v655_v38 = vld [vmem:[%s2542_s1 + $0xc8] sm:$0xff]  ;;  %v802_v42 = vpack.c.bf16 %v687_v35, %v686_v34  ;;  %v684_v50 = vld [vmem:[%s2542_s1 + $0x1b0] sm:$0xff] }
  0x18   :  { %1511 = vmatpush.bf16.msra.mxu1 %v777_v17  ;;  %1512 = vmatpush.bf16.msra.mxu2 %v777_v17  ;;  %v702_v39 = vld [vmem:[%s2542_s1 + $0x240] sm:$0xff]  ;;  %v703_v40 = vld [vmem:[%s2542_s1 + $0x248] sm:$0xff]  ;;  %v685_v51 = vld [vmem:[%s2542_s1 + $0x1b8] sm:$0xff] }
  0x19   :  { %1513 = vmatpush.bf16.msra.mxu3 %v777_v17  ;;  %850 = vmatpush.bf16.msra.mxu0 %v777_v17  ;;  %v1529_v24 = vpop.eup %1528  ;;  %v151_v46 = vld [vmem:[#allocation2 + $0x288] sm:$0xff]  ;;  %v652_v52 = vld [vmem:[%s2542_s1 + $0xb0] sm:$0xff]  ;;  %v701_v56 = vld [vmem:[%s2542_s1 + $0x238] sm:$0xff]  ;;  %v801_v62 = vpack.c.bf16 %v685_v51, %v684_v50 }
  0x1a   :  { %v41_v28 = vmul.f32 %v1529_v24, %v38_v18  ;;  %vm46_vm1 = vweird.f32 %v1529_v24  ;;  %v250_v57 = vld [vmem:[#allocation2 + $0x5a0] sm:$0xff]  ;;  %v259_v58 = vld [vmem:[#allocation2 + $0x5e8] sm:$0xff]  ;;  %v97_v60 = vld [vmem:[#allocation2 + $0xd8] sm:$0xff] }
  0x1b   :  { %vm1662_vm2 = vmor %vm45_vm0, %vm46_vm1  ;;  %v698_v13 = vld [vmem:[%s2542_s1 + $0x220] sm:$0xff] }
  0x1c   :  { %1514 = vmatpush.bf16.msra.mxu1 %v776_v21  ;;  %1515 = vmatpush.bf16.msra.mxu2 %v776_v21  ;;  %v42_v32 = vsub.f32 1.0, %v41_v28  ;;  %v803_v28 = vpack.c.bf16 %v689_v12, %v688_v11  ;;  %v651_v12 = vld [vmem:[%s2542_s1 + $0xa8] sm:$0xff] }
  0x1d   :  { %1516 = vmatpush.bf16.msra.mxu3 %v776_v21  ;;  %851 = vmatpush.bf16.msra.mxu0 %v776_v21  ;;  %v705_v21 = vld [vmem:[%s2542_s1 + $0x258] sm:$0xff] }
  0x1e   :  { %v43_v41 = vmul.f32 %v1529_v24, %v42_v32 }
  0x20   :  { %1517 = vmatpush.bf16.msra.mxu1 %v775_v25  ;;  %1518 = vmatpush.bf16.msra.mxu2 %v775_v25  ;;  %v44_v47 = vadd.f32 %v1529_v24, %v43_v41  ;;  %v794_v41 = vpack.c.bf16 %v671_v30, %v670_v29  ;;  %v649_v30 = vld [vmem:[%s2542_s1 + $0x98] sm:$0xff] }
  0x21   :  { %1519 = vmatpush.bf16.msra.mxu3 %v775_v25  ;;  %852 = vmatpush.bf16.msra.mxu0 %v775_v25 }
  0x22   :  { %v48_v59 = vsel %vm1662_vm2, %v1529_v24, %v44_v47  ;;  %v196_v47 = vld [vmem:[#allocation2 + $0x3f0] sm:$0xff] }
  0x23   :  { %v1704_v63 = vsel %vm1669_vm3, %v52_v43, %v48_v59  ;;  %v668_v43 = vld [vmem:[%s2542_s1 + $0x130] sm:$0xff] }
  0x24   :  { %1520 = vmatpush.bf16.msra.mxu1 %v774_v37  ;;  %1521 = vmatpush.bf16.msra.mxu2 %v774_v37  ;;  %v1707_v4 = vperm.slane %v1704_v63, 0  ;;  %v88_v59 = vld [vmem:[#allocation2 + $0x90] sm:$0xff] }
  0x25   :  { %1522 = vmatpush.bf16.msra.mxu3 %v774_v37  ;;  %853 = vmatpush.bf16.msra.mxu0 %v774_v37  ;;  %v811_v37 = vpack.c.bf16 %v705_v21, %v704_v20  ;;  %v664_v21 = vld [vmem:[%s2542_s1 + $0x110] sm:$0xff] }
  0x26   :  { %v360_v15 = vmul.f32 %v1707_v4, %v124_v54  ;;  %v369_v16 = vmul.f32 %v1707_v4, %v133_v55  ;;  %v414_v17 = vmul.f32 %v1707_v4, %v178_v0  ;;  %v423_v18 = vmul.f32 %v1707_v4, %v187_v1  ;;  %v653_v54 = vld [vmem:[%s2542_s1 + $0xb8] sm:$0xff]  ;;  %v700_v55 = vld [vmem:[%s2542_s1 + $0x230] sm:$0xff]  ;;  %v666_v0 = vld [vmem:[%s2542_s1 + $0x120] sm:$0xff] }
  0x27   :  { %v468_v22 = vmul.f32 %v1707_v4, %v232_v2  ;;  %v477_v23 = vmul.f32 %v1707_v4, %v241_v5  ;;  %v306_v24 = vmul.f32 %v1707_v4, %v70_v6  ;;  %v315_v25 = vmul.f32 %v1707_v4, %v79_v7  ;;  %v667_v1 = vld [vmem:[%s2542_s1 + $0x128] sm:$0xff]  ;;  %v650_v6 = vld [vmem:[%s2542_s1 + $0xa0] sm:$0xff] }
  0x28   :  { %984 = vmatpush.bf16.msrb.mxu2 %v797_v44  ;;  %915 = vmatpush.bf16.msrb.mxu1 %v789_v49  ;;  %v549_v26 = vpack.c.bf16 %v369_v16, %v360_v15  ;;  %v576_v27 = vpack.c.bf16 %v423_v18, %v414_v17  ;;  %v669_v44 = vld [vmem:[%s2542_s1 + $0x138] sm:$0xff]  ;;  %v786_v49 = vpack.c.bf16 %v655_v38, %v654_v36  ;;  %v683_v5 = vld [vmem:[%s2542_s1 + $0x1a8] sm:$0xff] }
  0x29   :  { %1053 = vmatpush.bf16.msrb.mxu3 %v805_v45  ;;  %1122 = vmatpush.bf16.msrb.mxu0 %v813_v53  ;;  %v603_v31 = vpack.c.bf16 %v477_v23, %v468_v22  ;;  %v522_v32 = vpack.c.bf16 %v315_v25, %v306_v24  ;;  %v142_v45 = vld [vmem:[#allocation2 + $0x240] sm:$0xff]  ;;  %v810_v53 = vpack.c.bf16 %v703_v40, %v702_v39  ;;  %v665_v22 = vld [vmem:[%s2542_s1 + $0x118] sm:$0xff]  ;;  %v680_v24 = vld [vmem:[%s2542_s1 + $0x190] sm:$0xff] }
  0x2a   :  { %869 = vmatmul.bf16.vlgmr.msra.gmra.mxu1 %v549_v26  ;;  %884 = vmatmul.bf16.vlgmr.msra.gmra.mxu2 %v576_v27  ;;  %v793_v61 = vpack.c.bf16 %v669_v44, %v668_v43  ;;  %v785_v2 = vpack.c.bf16 %v653_v54, %v652_v52  ;;  %v809_v7 = vpack.c.bf16 %v701_v56, %v700_v55  ;;  %v681_v25 = vld [vmem:[%s2542_s1 + $0x198] sm:$0xff]  ;;  %v648_v27 = vld [vmem:[%s2542_s1 + $0x90] sm:$0xff]  ;;  %v663_v38 = vld [vmem:[%s2542_s1 + $0x108] sm:$0xff] }
  0x2b   :  { %899 = vmatmul.bf16.vlgmr.msra.gmra.mxu3 %v603_v31  ;;  %854 = vmatmul.bf16.vlgmr.msra.gmra.mxu0 %v522_v32  ;;  %v441_v11 = vmul.f32 %v1707_v4, %v205_v48  ;;  %v486_v15 = vmul.f32 %v1707_v4, %v250_v57  ;;  %v495_v16 = vmul.f32 %v1707_v4, %v259_v58  ;;  %v696_v31 = vld [vmem:[%s2542_s1 + $0x210] sm:$0xff]  ;;  %v697_v32 = vld [vmem:[%s2542_s1 + $0x218] sm:$0xff]  ;;  %v646_v43 = vld [vmem:[%s2542_s1 + $0x80] sm:$0xff] }
  0x2c   :  { %985 = vmatpush.bf16.msrb.mxu2 %v796_v3  ;;  %916 = vmatpush.bf16.msrb.mxu1 %v788_v9  ;;  %v682_v3 = vld [vmem:[%s2542_s1 + $0x1a0] sm:$0xff]  ;;  %v387_v9 = vmul.f32 %v1707_v4, %v151_v46  ;;  %v324_v17 = vmul.f32 %v1707_v4, %v88_v59  ;;  %v333_v18 = vmul.f32 %v1707_v4, %v97_v60  ;;  %v647_v44 = vld [vmem:[%s2542_s1 + $0x88] sm:$0xff]  ;;  %v741_v48 = vld [vmem:[%s2542_s1 + $0x378] sm:$0xff] }
  0x2d   :  { %1054 = vmatpush.bf16.msrb.mxu3 %v804_v8  ;;  %1123 = vmatpush.bf16.msrb.mxu0 %v812_v14  ;;  %v378_v8 = vmul.f32 %v1707_v4, %v142_v45  ;;  %v699_v14 = vld [vmem:[%s2542_s1 + $0x228] sm:$0xff]  ;;  %v792_v19 = vpack.c.bf16 %v667_v1, %v666_v0  ;;  %v800_v20 = vpack.c.bf16 %v683_v5, %v682_v3  ;;  %v694_v45 = vld [vmem:[%s2542_s1 + $0x200] sm:$0xff]  ;;  %v757_v52 = vld [vmem:[%s2542_s1 + $0x3f8] sm:$0xff] }
  0x2e   :  { %v784_v23 = vpack.c.bf16 %v651_v12, %v650_v6  ;;  %v808_v26 = vpack.c.bf16 %v699_v14, %v698_v13  ;;  %v531_v34 = vpack.c.bf16 %v333_v18, %v324_v17  ;;  %v791_v35 = vpack.c.bf16 %v665_v22, %v664_v21  ;;  %v695_v46 = vld [vmem:[%s2542_s1 + $0x208] sm:$0xff]  ;;  %v725_v54 = vld [vmem:[%s2542_s1 + $0x2f8] sm:$0xff]  ;;  %v772_v57 = vld [vmem:[%s2542_s1 + $0x470] sm:$0xff] }
  0x2f   :  { %v799_v36 = vpack.c.bf16 %v681_v25, %v680_v24  ;;  %v783_v39 = vpack.c.bf16 %v649_v30, %v648_v27  ;;  %v807_v40 = vpack.c.bf16 %v697_v32, %v696_v31  ;;  %v782_v55 = vpack.c.bf16 %v647_v44, %v646_v43  ;;  %v773_v58 = vld [vmem:[%s2542_s1 + $0x478] sm:$0xff]  ;;  %v160_v59 = vld [vmem:[#allocation2 + $0x2d0] sm:$0xff]  ;;  %v214_v0 = vld [vmem:[#allocation2 + $0x480] sm:$0xff] }
  0x30   :  { %986 = vmatpush.bf16.msrb.mxu2 %v795_v10  ;;  %917 = vmatpush.bf16.msrb.mxu1 %v787_v33  ;;  %v432_v10 = vmul.f32 %v1707_v4, %v196_v47  ;;  %v612_v33 = vpack.c.bf16 %v495_v16, %v486_v15  ;;  %v740_v47 = vld [vmem:[%s2542_s1 + $0x370] sm:$0xff]  ;;  %v806_v56 = vpack.c.bf16 %v695_v46, %v694_v45  ;;  %v169_v60 = vld [vmem:[#allocation2 + $0x318] sm:$0xff]  ;;  %v223_v1 = vld [vmem:[#allocation2 + $0x4c8] sm:$0xff]  ;;  %v1914_v31 = vperm.slane %v1704_v63, 1 }
  0x31   :  { %1055 = vmatpush.bf16.msrb.mxu3 %v803_v28  ;;  %1124 = vmatpush.bf16.msrb.mxu0 %v811_v37  ;;  %v558_v28 = vpack.c.bf16 %v387_v9, %v378_v8  ;;  %v662_v37 = vld [vmem:[%s2542_s1 + $0x100] sm:$0xff]  ;;  %v845_v5 = vpack.c.bf16 %v773_v58, %v772_v57  ;;  %v277_v6 = vld [vmem:[#allocation2 + $0x678] sm:$0xff]  ;;  %v115_v8 = vld [vmem:[#allocation2 + $0x168] sm:$0xff]  ;;  %v396_v9 = vmul.f32 %v1707_v4, %v160_v59  ;;  %v1917_v32 = vperm.slane %v1704_v63, 2 }
  0x32   :  { %v585_v29 = vpack.c.bf16 %v441_v11, %v432_v10  ;;  %v790_v50 = vpack.c.bf16 %v663_v38, %v662_v37  ;;  %v405_v10 = vmul.f32 %v1707_v4, %v169_v60  ;;  %v450_v11 = vmul.f32 %v1707_v4, %v214_v0  ;;  %v738_v21 = vld [vmem:[%s2542_s1 + $0x360] sm:$0xff]  ;;  %v739_v22 = vld [vmem:[%s2542_s1 + $0x368] sm:$0xff]  ;;  %v80_v30 = vld [vmem:[#allocation2 + $0x50] sm:$0xff] }
  0x33   :  { %v459_v12 = vmul.f32 %v1707_v4, %v223_v1  ;;  %v513_v14 = vmul.f32 %v1707_v4, %v277_v6  ;;  %v351_v16 = vmul.f32 %v1707_v4, %v115_v8  ;;  %v755_v24 = vld [vmem:[%s2542_s1 + $0x3e8] sm:$0xff]  ;;  %v722_v25 = vld [vmem:[%s2542_s1 + $0x2e0] sm:$0xff]  ;;  %v1923_v37 = vperm.slane %v1704_v63, 4  ;;  %v101_v0 = vld [vmem:[#allocation2 + $0xf8] sm:$0xff] }
  0x34   :  { %987 = vmatpush.bf16.msrb.mxu2 %v794_v41  ;;  %918 = vmatpush.bf16.msrb.mxu1 %v786_v49  ;;  %v678_v41 = vld [vmem:[%s2542_s1 + $0x180] sm:$0xff]  ;;  %v756_v49 = vld [vmem:[%s2542_s1 + $0x3f0] sm:$0xff]  ;;  %v567_v17 = vpack.c.bf16 %v405_v10, %v396_v9  ;;  %v99_v59 = vld [vmem:[#allocation2 + $0xe8] sm:$0xff] }
  0x35   :  { %1056 = vmatpush.bf16.msrb.mxu3 %v802_v42  ;;  %1125 = vmatpush.bf16.msrb.mxu0 %v810_v53  ;;  %v679_v42 = vld [vmem:[%s2542_s1 + $0x188] sm:$0xff]  ;;  %v724_v53 = vld [vmem:[%s2542_s1 + $0x2f0] sm:$0xff]  ;;  %v594_v18 = vpack.c.bf16 %v459_v12, %v450_v11  ;;  %v82_v38 = vld [vmem:[#allocation2 + $0x60] sm:$0xff]  ;;  %v337_v9 = vmul.f32 %v1923_v37, %v101_v0 }
  0x36   :  { %v798_v51 = vpack.c.bf16 %v679_v42, %v678_v41  ;;  %v821_v3 = vpack.c.bf16 %v725_v54, %v724_v53  ;;  %v316_v42 = vmul.f32 %v1914_v31, %v80_v30  ;;  %v770_v53 = vld [vmem:[%s2542_s1 + $0x460] sm:$0xff]  ;;  %v771_v54 = vld [vmem:[%s2542_s1 + $0x468] sm:$0xff]  ;;  %v136_v0 = vld [vmem:[#allocation2 + $0x210] sm:$0xff] }
  0x37   :  { %v98_v57 = vld [vmem:[#allocation2 + $0xe0] sm:$0xff]  ;;  %v91_v60 = vld [vmem:[#allocation2 + $0xa8] sm:$0xff] }
  0x38   :  { %988 = vmatpush.bf16.msrb.mxu2 %v793_v61  ;;  %919 = vmatpush.bf16.msrb.mxu1 %v785_v2  ;;  %v829_v61 = vpack.c.bf16 %v741_v48, %v740_v47  ;;  %v268_v2 = vld [vmem:[#allocation2 + $0x630] sm:$0xff]  ;;  %v90_v58 = vld [vmem:[#allocation2 + $0xa0] sm:$0xff] }
  0x39   :  { %1057 = vmatpush.bf16.msrb.mxu3 %v801_v62  ;;  %1126 = vmatpush.bf16.msrb.mxu0 %v809_v7  ;;  %v837_v62 = vpack.c.bf16 %v757_v52, %v756_v49  ;;  %v106_v7 = vld [vmem:[#allocation2 + $0x120] sm:$0xff]  ;;  %v504_v13 = vmul.f32 %v1707_v4, %v268_v2  ;;  %v334_v2 = vmul.f32 %v1914_v31, %v98_v57 }
  0x3a   :  { %874 = vmatmul.bf16.gmra.mxu1 %v558_v28  ;;  %889 = vmatmul.bf16.gmra.mxu2 %v585_v29  ;;  %v342_v15 = vmul.f32 %v1707_v4, %v106_v7  ;;  %v754_v4 = vld [vmem:[%s2542_s1 + $0x3e0] sm:$0xff]  ;;  %v71_v29 = vld [vmem:[#allocation2 + $0x8] sm:$0xff] }
  0x3b   :  { %904 = vmatmul.bf16.gmra.mxu3 %v612_v33  ;;  %859 = vmatmul.bf16.gmra.mxu0 %v531_v34  ;;  %v836_v27 = vpack.c.bf16 %v755_v24, %v754_v4  ;;  %v72_v33 = vld [vmem:[#allocation2 + $0x10] sm:$0xff]  ;;  %v81_v34 = vld [vmem:[#allocation2 + $0x58] sm:$0xff]  ;;  %v307_v41 = vmul.f32 %v1914_v31, %v71_v29  ;;  %v107_v24 = vld [vmem:[#allocation2 + $0x128] sm:$0xff] }
  0x3c   :  { %989 = vmatpush.bf16.msrb.mxu2 %v792_v19  ;;  %920 = vmatpush.bf16.msrb.mxu1 %v784_v23  ;;  %v621_v19 = vpack.c.bf16 %v513_v14, %v504_v13  ;;  %v828_v23 = vpack.c.bf16 %v739_v22, %v738_v21  ;;  %v308_v43 = vmul.f32 %v1917_v32, %v72_v33  ;;  %v736_v14 = vld [vmem:[%s2542_s1 + $0x350] sm:$0xff]  ;;  %v109_v29 = vld [vmem:[#allocation2 + $0x138] sm:$0xff]  ;;  %v118_v30 = vld [vmem:[#allocation2 + $0x180] sm:$0xff] }
  0x3d   :  { %1058 = vmatpush.bf16.msrb.mxu3 %v800_v20  ;;  %1127 = vmatpush.bf16.msrb.mxu0 %v808_v26  ;;  %v540_v20 = vpack.c.bf16 %v351_v16, %v342_v15  ;;  %v723_v26 = vld [vmem:[%s2542_s1 + $0x2e8] sm:$0xff]  ;;  %v317_v44 = vmul.f32 %v1917_v32, %v81_v34  ;;  %v523_v49 = vpack.c.bf16 %v316_v42, %v307_v41  ;;  %v737_v15 = vld [vmem:[%s2542_s1 + $0x358] sm:$0xff]  ;;  %v752_v16 = vld [vmem:[%s2542_s1 + $0x3d0] sm:$0xff] }
  0x3e   :  { %v820_v28 = vpack.c.bf16 %v723_v26, %v722_v25  ;;  %v768_v4 = vld [vmem:[%s2542_s1 + $0x450] sm:$0xff]  ;;  %v110_v33 = vld [vmem:[#allocation2 + $0x140] sm:$0xff]  ;;  %v119_v34 = vld [vmem:[#allocation2 + $0x188] sm:$0xff] }
  0x3f   :  { %v116_v25 = vld [vmem:[#allocation2 + $0x170] sm:$0xff] }
  0x40   :  { %990 = vmatpush.bf16.msrb.mxu2 %v791_v35  ;;  %921 = vmatpush.bf16.msrb.mxu1 %v783_v39  ;;  %v73_v35 = vld [vmem:[#allocation2 + $0x18] sm:$0xff]  ;;  %v74_v39 = vld [vmem:[#allocation2 + $0x20] sm:$0xff] }
  0x41   :  { %1059 = vmatpush.bf16.msrb.mxu3 %v799_v36  ;;  %1128 = vmatpush.bf16.msrb.mxu0 %v807_v40  ;;  %v1920_v36 = vperm.slane %v1704_v63, 3  ;;  %v83_v40 = vld [vmem:[#allocation2 + $0x68] sm:$0xff]  ;;  %v310_v47 = vmul.f32 %v1923_v37, %v74_v39 }
  0x42   :  { %v319_v48 = vmul.f32 %v1923_v37, %v83_v40 }
  0x43   :  { %v309_v45 = vmul.f32 %v1920_v36, %v73_v35  ;;  %v318_v46 = vmul.f32 %v1920_v36, %v82_v38  ;;  %v327_v6 = vmul.f32 %v1920_v36, %v91_v60  ;;  %v343_v35 = vmul.f32 %v1914_v31, %v107_v24  ;;  %v126_v60 = vld [vmem:[#allocation2 + $0x1c0] sm:$0xff] }
  0x44   :  { %991 = vmatpush.bf16.msrb.mxu2 %v790_v50  ;;  %922 = vmatpush.bf16.msrb.mxu1 %v782_v55  ;;  %v524_v50 = vpack.c.bf16 %v317_v44, %v308_v43  ;;  %v526_v52 = vpack.c.bf16 %v319_v48, %v310_v47  ;;  %v844_v55 = vpack.c.bf16 %v771_v54, %v770_v53  ;;  %v751_v53 = vld [vmem:[%s2542_s1 + $0x3c8] sm:$0xff]  ;;  %v718_v54 = vld [vmem:[%s2542_s1 + $0x2c0] sm:$0xff] }
  0x45   :  { %1060 = vmatpush.bf16.msrb.mxu3 %v798_v51  ;;  %1129 = vmatpush.bf16.msrb.mxu0 %v806_v56  ;;  %v525_v51 = vpack.c.bf16 %v318_v46, %v309_v45  ;;  %v89_v56 = vld [vmem:[#allocation2 + $0x98] sm:$0xff]  ;;  %v352_v38 = vmul.f32 %v1914_v31, %v116_v25  ;;  %v345_v41 = vmul.f32 %v1920_v36, %v109_v29  ;;  %v146_v24 = vld [vmem:[#allocation2 + $0x260] sm:$0xff]  ;;  %v155_v25 = vld [vmem:[#allocation2 + $0x2a8] sm:$0xff] }
  0x46   :  { %v325_v1 = vmul.f32 %v1914_v31, %v89_v56  ;;  %v354_v42 = vmul.f32 %v1920_v36, %v118_v30  ;;  %v346_v43 = vmul.f32 %v1923_v37, %v110_v33  ;;  %v355_v44 = vmul.f32 %v1923_v37, %v119_v34 }
  0x47   :  { %v541_v45 = vpack.c.bf16 %v352_v38, %v343_v35  ;;  %v382_v34 = vmul.f32 %v1923_v37, %v146_v24  ;;  %v391_v35 = vmul.f32 %v1923_v37, %v155_v25  ;;  %v730_v25 = vld [vmem:[%s2542_s1 + $0x320] sm:$0xff] }
  0x48   :  { %1260 = vmatpush.bf16.msra.mxu2 %v829_v61  ;;  %1191 = vmatpush.bf16.msra.mxu1 %v821_v3  ;;  %v100_v61 = vld [vmem:[#allocation2 + $0xf0] sm:$0xff]  ;;  %v326_v3 = vmul.f32 %v1917_v32, %v90_v58  ;;  %v532_v10 = vpack.c.bf16 %v334_v2, %v325_v1  ;;  %v543_v47 = vpack.c.bf16 %v354_v42, %v345_v41  ;;  %v125_v58 = vld [vmem:[#allocation2 + $0x1b8] sm:$0xff] }
  0x49   :  { %1329 = vmatpush.bf16.msra.mxu3 %v837_v62  ;;  %1398 = vmatpush.bf16.msra.mxu0 %v845_v5  ;;  %v92_v62 = vld [vmem:[#allocation2 + $0xb0] sm:$0xff]  ;;  %v335_v5 = vmul.f32 %v1917_v32, %v99_v59  ;;  %v336_v7 = vmul.f32 %v1920_v36, %v100_v61  ;;  %v544_v48 = vpack.c.bf16 %v355_v44, %v346_v43  ;;  %v134_v59 = vld [vmem:[#allocation2 + $0x200] sm:$0xff]  ;;  %v135_v61 = vld [vmem:[#allocation2 + $0x208] sm:$0xff] }
  0x4a   :  { %879 = vmatmul.bf16.gmra.mxu1 %v567_v17  ;;  %894 = vmatmul.bf16.gmra.mxu2 %v594_v18  ;;  %v328_v8 = vmul.f32 %v1923_v37, %v92_v62  ;;  %v827_v17 = vpack.c.bf16 %v737_v15, %v736_v14  ;;  %v753_v18 = vld [vmem:[%s2542_s1 + $0x3d8] sm:$0xff]  ;;  %v127_v62 = vld [vmem:[#allocation2 + $0x1c8] sm:$0xff]  ;;  %v128_v1 = vld [vmem:[#allocation2 + $0x1d0] sm:$0xff]  ;;  %v562_v41 = vpack.c.bf16 %v391_v35, %v382_v34 }
  0x4b   :  { %909 = vmatmul.bf16.gmra.mxu3 %v621_v19  ;;  %864 = vmatmul.bf16.gmra.mxu0 %v540_v20  ;;  %v533_v11 = vpack.c.bf16 %v335_v5, %v326_v3  ;;  %v534_v12 = vpack.c.bf16 %v336_v7, %v327_v6  ;;  %v720_v19 = vld [vmem:[%s2542_s1 + $0x2d0] sm:$0xff]  ;;  %v721_v20 = vld [vmem:[%s2542_s1 + $0x2d8] sm:$0xff]  ;;  %v835_v21 = vpack.c.bf16 %v753_v18, %v752_v16  ;;  %v766_v16 = vld [vmem:[%s2542_s1 + $0x440] sm:$0xff] }
  0x4c   :  { %1261 = vmatpush.bf16.msra.mxu2 %v828_v23  ;;  %1192 = vmatpush.bf16.msra.mxu1 %v820_v28  ;;  %v535_v13 = vpack.c.bf16 %v337_v9, %v328_v8  ;;  %v819_v22 = vpack.c.bf16 %v721_v20, %v720_v19  ;;  %v769_v23 = vld [vmem:[%s2542_s1 + $0x458] sm:$0xff]  ;;  %v361_v3 = vmul.f32 %v1914_v31, %v125_v58  ;;  %v143_v19 = vld [vmem:[#allocation2 + $0x248] sm:$0xff]  ;;  %v152_v20 = vld [vmem:[#allocation2 + $0x290] sm:$0xff] }
  0x4d   :  { %1330 = vmatpush.bf16.msra.mxu3 %v836_v27  ;;  %1399 = vmatpush.bf16.msra.mxu0 %v844_v55  ;;  %v843_v26 = vpack.c.bf16 %v769_v23, %v768_v4  ;;  %v108_v27 = vld [vmem:[#allocation2 + $0x130] sm:$0xff]  ;;  %v117_v28 = vld [vmem:[#allocation2 + $0x178] sm:$0xff]  ;;  %v719_v55 = vld [vmem:[%s2542_s1 + $0x2c8] sm:$0xff]  ;;  %v370_v5 = vmul.f32 %v1914_v31, %v134_v59  ;;  %v362_v6 = vmul.f32 %v1917_v32, %v126_v60 }
  0x4e   :  { %v344_v39 = vmul.f32 %v1917_v32, %v108_v27  ;;  %v353_v40 = vmul.f32 %v1917_v32, %v117_v28  ;;  %v818_v57 = vpack.c.bf16 %v719_v55, %v718_v54  ;;  %v137_v2 = vld [vmem:[#allocation2 + $0x218] sm:$0xff]  ;;  %v371_v7 = vmul.f32 %v1917_v32, %v135_v61  ;;  %v154_v23 = vld [vmem:[#allocation2 + $0x2a0] sm:$0xff]  ;;  %v732_v42 = vld [vmem:[%s2542_s1 + $0x330] sm:$0xff] }
  0x4f   :  { %v363_v8 = vmul.f32 %v1920_v36, %v127_v62  ;;  %v372_v9 = vmul.f32 %v1920_v36, %v136_v0  ;;  %v145_v4 = vld [vmem:[#allocation2 + $0x258] sm:$0xff]  ;;  %v388_v27 = vmul.f32 %v1914_v31, %v152_v20  ;;  %v390_v33 = vmul.f32 %v1920_v36, %v154_v23  ;;  %v748_v44 = vld [vmem:[%s2542_s1 + $0x3b0] sm:$0xff]  ;;  %v163_v54 = vld [vmem:[#allocation2 + $0x2e8] sm:$0xff] }
  0x50   :  { %1262 = vmatpush.bf16.msra.mxu2 %v827_v17  ;;  %1193 = vmatpush.bf16.msra.mxu1 %v819_v22  ;;  %v542_v46 = vpack.c.bf16 %v353_v40, %v344_v39  ;;  %v767_v17 = vld [vmem:[%s2542_s1 + $0x448] sm:$0xff]  ;;  %v153_v22 = vld [vmem:[#allocation2 + $0x298] sm:$0xff]  ;;  %v381_v30 = vmul.f32 %v1920_v36, %v145_v4  ;;  %v172_v55 = vld [vmem:[#allocation2 + $0x330] sm:$0xff] }
  0x51   :  { %1331 = vmatpush.bf16.msra.mxu3 %v835_v21  ;;  %1400 = vmatpush.bf16.msra.mxu0 %v843_v26  ;;  %v552_v14 = vpack.c.bf16 %v372_v9, %v363_v8  ;;  %v842_v18 = vpack.c.bf16 %v767_v17, %v766_v16  ;;  %v144_v21 = vld [vmem:[#allocation2 + $0x250] sm:$0xff]  ;;  %v379_v26 = vmul.f32 %v1914_v31, %v143_v19  ;;  %v733_v43 = vld [vmem:[%s2542_s1 + $0x338] sm:$0xff]  ;;  %v182_v4 = vld [vmem:[#allocation2 + $0x380] sm:$0xff] }
  0x52   :  { %v380_v28 = vmul.f32 %v1917_v32, %v144_v21  ;;  %v389_v29 = vmul.f32 %v1917_v32, %v153_v22  ;;  %v561_v40 = vpack.c.bf16 %v390_v33, %v381_v30  ;;  %v173_v58 = vld [vmem:[#allocation2 + $0x338] sm:$0xff]  ;;  %v764_v59 = vld [vmem:[%s2542_s1 + $0x430] sm:$0xff]  ;;  %v190_v22 = vld [vmem:[#allocation2 + $0x3c0] sm:$0xff] }
  0x53   :  { %v559_v38 = vpack.c.bf16 %v388_v27, %v379_v26  ;;  %v765_v60 = vld [vmem:[%s2542_s1 + $0x438] sm:$0xff]  ;;  %v188_v16 = vld [vmem:[#allocation2 + $0x3b0] sm:$0xff]  ;;  %v191_v23 = vld [vmem:[#allocation2 + $0x3c8] sm:$0xff] }
  0x54   :  { %1194 = vmatpush.bf16.msra.mxu1 %v818_v57  ;;  %v560_v39 = vpack.c.bf16 %v389_v29, %v380_v28  ;;  %v841_v61 = vpack.c.bf16 %v765_v60, %v764_v59  ;;  %v189_v19 = vld [vmem:[#allocation2 + $0x3b8] sm:$0xff]  ;;  %v731_v26 = vld [vmem:[%s2542_s1 + $0x328] sm:$0xff]  ;;  %v746_v27 = vld [vmem:[%s2542_s1 + $0x3a0] sm:$0xff]  ;;  %v424_v33 = vmul.f32 %v1914_v31, %v188_v16 }
  0x55   :  { %1401 = vmatpush.bf16.msra.mxu0 %v842_v18  ;;  %v180_v18 = vld [vmem:[#allocation2 + $0x370] sm:$0xff]  ;;  %v181_v20 = vld [vmem:[#allocation2 + $0x378] sm:$0xff]  ;;  %v824_v29 = vpack.c.bf16 %v731_v26, %v730_v25  ;;  %v747_v30 = vld [vmem:[%s2542_s1 + $0x3a8] sm:$0xff]  ;;  %v425_v35 = vmul.f32 %v1917_v32, %v189_v19 }
  0x56   :  { %v416_v34 = vmul.f32 %v1917_v32, %v180_v18  ;;  %v197_v59 = vld [vmem:[#allocation2 + $0x3f8] sm:$0xff]  ;;  %v206_v60 = vld [vmem:[#allocation2 + $0x440] sm:$0xff] }
  0x59   :  { %1402 = vmatpush.bf16.msra.mxu0 %v841_v61 }
  0x5a   :  { %923 = vmatmul.bf16.vlgmr.msrb.gmra.mxu1 %v523_v49  ;;  %992 = vmatmul.bf16.vlgmr.msrb.gmra.mxu2 %v524_v50  ;;  %v734_v49 = vld [vmem:[%s2542_s1 + $0x340] sm:$0xff]  ;;  %v735_v50 = vld [vmem:[%s2542_s1 + $0x348] sm:$0xff] }
  0x5b   :  { %1061 = vmatmul.bf16.vlgmr.msrb.gmra.mxu3 %v525_v51  ;;  %1130 = vmatmul.bf16.vlgmr.msrb.gmra.mxu0 %v526_v52  ;;  %v750_v51 = vld [vmem:[%s2542_s1 + $0x3c0] sm:$0xff]  ;;  %v826_v52 = vpack.c.bf16 %v735_v50, %v734_v49 }
  0x5c   :  { %v834_v56 = vpack.c.bf16 %v751_v53, %v750_v51  ;;  %v162_v49 = vld [vmem:[#allocation2 + $0x2e0] sm:$0xff]  ;;  %v171_v51 = vld [vmem:[#allocation2 + $0x328] sm:$0xff]  ;;  %v717_v53 = vld [vmem:[%s2542_s1 + $0x2b8] sm:$0xff] }
  0x5d   :  { %1263 = vmatpush.bf16.msra.mxu2 %v826_v52  ;;  %v716_v52 = vld [vmem:[%s2542_s1 + $0x2b0] sm:$0xff] }
  0x5e   :  { %1332 = vmatpush.bf16.msra.mxu3 %v834_v56  ;;  %v164_v56 = vld [vmem:[#allocation2 + $0x2f0] sm:$0xff]  ;;  %v817_v57 = vpack.c.bf16 %v717_v53, %v716_v52 }
  0x60   :  { %1195 = vmatpush.bf16.msra.mxu1 %v817_v57 }
  0x6a   :  { %928 = vmatmul.bf16.gmra.mxu1 %v532_v10  ;;  %997 = vmatmul.bf16.gmra.mxu2 %v533_v11  ;;  %v364_v10 = vmul.f32 %v1923_v37, %v128_v1  ;;  %v373_v11 = vmul.f32 %v1923_v37, %v137_v2  ;;  %v398_v1 = vmul.f32 %v1917_v32, %v162_v49 }
  0x6b   :  { %1066 = vmatmul.bf16.gmra.mxu3 %v534_v12  ;;  %1135 = vmatmul.bf16.gmra.mxu0 %v535_v13  ;;  %v550_v12 = vpack.c.bf16 %v370_v5, %v361_v3  ;;  %v551_v13 = vpack.c.bf16 %v371_v7, %v362_v6  ;;  %v407_v2 = vmul.f32 %v1917_v32, %v171_v51 }
  0x6c   :  { %v553_v15 = vpack.c.bf16 %v373_v11, %v364_v10  ;;  %v399_v3 = vmul.f32 %v1920_v36, %v163_v54  ;;  %v408_v5 = vmul.f32 %v1920_v36, %v172_v55  ;;  %v400_v6 = vmul.f32 %v1923_v37, %v164_v56  ;;  %v762_v54 = vld [vmem:[%s2542_s1 + $0x420] sm:$0xff]  ;;  %v763_v55 = vld [vmem:[%s2542_s1 + $0x428] sm:$0xff] }
  0x6d   :  { %v409_v7 = vmul.f32 %v1923_v37, %v173_v58  ;;  %v569_v9 = vpack.c.bf16 %v407_v2, %v398_v1  ;;  %v840_v56 = vpack.c.bf16 %v763_v55, %v762_v54  ;;  %v199_v1 = vld [vmem:[#allocation2 + $0x408] sm:$0xff]  ;;  %v712_v54 = vld [vmem:[%s2542_s1 + $0x290] sm:$0xff]  ;;  %v713_v55 = vld [vmem:[%s2542_s1 + $0x298] sm:$0xff] }
  0x6e   :  { %v570_v11 = vpack.c.bf16 %v408_v5, %v399_v3  ;;  %v208_v3 = vld [vmem:[#allocation2 + $0x450] sm:$0xff] }
  0x6f   :  { %1403 = vmatpush.bf16.msra.mxu0 %v840_v56  ;;  %v200_v5 = vld [vmem:[#allocation2 + $0x410] sm:$0xff] }
  0x70   :  { %v436_v16 = vmul.f32 %v1923_v37, %v200_v5  ;;  %v760_v56 = vld [vmem:[%s2542_s1 + $0x410] sm:$0xff] }
  0x7a   :  { %933 = vmatmul.bf16.gmra.mxu1 %v541_v45  ;;  %1002 = vmatmul.bf16.gmra.mxu2 %v542_v46  ;;  %v825_v45 = vpack.c.bf16 %v733_v43, %v732_v42  ;;  %v749_v46 = vld [vmem:[%s2542_s1 + $0x3b8] sm:$0xff]  ;;  %v427_v42 = vmul.f32 %v1923_v37, %v191_v23 }
  0x7b   :  { %1071 = vmatmul.bf16.gmra.mxu3 %v543_v47  ;;  %1140 = vmatmul.bf16.gmra.mxu0 %v544_v48  ;;  %v161_v47 = vld [vmem:[#allocation2 + $0x2d8] sm:$0xff]  ;;  %v170_v48 = vld [vmem:[#allocation2 + $0x320] sm:$0xff]  ;;  %v833_v50 = vpack.c.bf16 %v749_v46, %v748_v44  ;;  %v578_v46 = vpack.c.bf16 %v425_v35, %v416_v34 }
  0x7c   :  { %1264 = vmatpush.bf16.msra.mxu2 %v825_v45  ;;  %v397_v62 = vmul.f32 %v1914_v31, %v161_v47  ;;  %v406_v0 = vmul.f32 %v1914_v31, %v170_v48  ;;  %v714_v47 = vld [vmem:[%s2542_s1 + $0x2a0] sm:$0xff]  ;;  %v715_v48 = vld [vmem:[%s2542_s1 + $0x2a8] sm:$0xff]  ;;  %v745_v34 = vld [vmem:[%s2542_s1 + $0x398] sm:$0xff] }
  0x7d   :  { %1333 = vmatpush.bf16.msra.mxu3 %v833_v50  ;;  %v816_v52 = vpack.c.bf16 %v715_v48, %v714_v47  ;;  %v226_v48 = vld [vmem:[#allocation2 + $0x4e0] sm:$0xff] }
  0x7e   :  { %v568_v8 = vpack.c.bf16 %v406_v0, %v397_v62  ;;  %v198_v62 = vld [vmem:[#allocation2 + $0x400] sm:$0xff]  ;;  %v207_v0 = vld [vmem:[#allocation2 + $0x448] sm:$0xff] }
  0x7f   :  { %1196 = vmatpush.bf16.msra.mxu1 %v816_v52 }
  0x80   :  { %1265 = vmatpush.bf16.msra.mxu2 %v824_v29  ;;  %v729_v29 = vld [vmem:[%s2542_s1 + $0x318] sm:$0xff] }
  0x8a   :  { %938 = vmatmul.bf16.gmra.mxu1 %v550_v12  ;;  %1007 = vmatmul.bf16.gmra.mxu2 %v551_v13  ;;  %v571_v12 = vpack.c.bf16 %v409_v7, %v400_v6  ;;  %v209_v6 = vld [vmem:[#allocation2 + $0x458] sm:$0xff]  ;;  %v433_v7 = vmul.f32 %v1914_v31, %v197_v59 }
  0x8b   :  { %1076 = vmatmul.bf16.gmra.mxu3 %v552_v14  ;;  %1145 = vmatmul.bf16.gmra.mxu0 %v553_v15  ;;  %v179_v15 = vld [vmem:[#allocation2 + $0x368] sm:$0xff]  ;;  %v445_v18 = vmul.f32 %v1923_v37, %v209_v6 }
  0x8c   :  { %v415_v28 = vmul.f32 %v1914_v31, %v179_v15  ;;  %v444_v15 = vmul.f32 %v1920_v36, %v208_v3 }
  0x8d   :  { %v589_v26 = vpack.c.bf16 %v445_v18, %v436_v16 }
  0x8e   :  { %v577_v45 = vpack.c.bf16 %v424_v33, %v415_v28  ;;  %v728_v28 = vld [vmem:[%s2542_s1 + $0x310] sm:$0xff] }
  0x8f   :  { %v823_v33 = vpack.c.bf16 %v729_v29, %v728_v28  ;;  %v31_v28 = vld [vmem:[%s2541_s0 + $0x8] sm:$0x1] }
  0x91   :  { %1266 = vmatpush.bf16.msra.mxu2 %v823_v33  ;;  %v242_v33 = vld [vmem:[#allocation2 + $0x560] sm:$0xff] }
  0x9a   :  { %943 = vmatmul.bf16.gmra.mxu1 %v559_v38  ;;  %1012 = vmatmul.bf16.gmra.mxu2 %v560_v39  ;;  %v832_v38 = vpack.c.bf16 %v747_v30, %v746_v27  ;;  %v417_v39 = vmul.f32 %v1920_v36, %v181_v20  ;;  %v744_v30 = vld [vmem:[%s2542_s1 + $0x390] sm:$0xff] }
  0x9b   :  { %1081 = vmatmul.bf16.gmra.mxu3 %v561_v40  ;;  %1150 = vmatmul.bf16.gmra.mxu0 %v562_v41  ;;  %v426_v40 = vmul.f32 %v1920_v36, %v190_v22  ;;  %v418_v41 = vmul.f32 %v1923_v37, %v182_v4 }
  0x9c   :  { %1334 = vmatpush.bf16.msra.mxu3 %v832_v38  ;;  %v215_v38 = vld [vmem:[#allocation2 + $0x488] sm:$0xff] }
  0x9d   :  { %v579_v50 = vpack.c.bf16 %v426_v40, %v417_v39  ;;  %v580_v51 = vpack.c.bf16 %v427_v42, %v418_v41  ;;  %v224_v39 = vld [vmem:[#allocation2 + $0x4d0] sm:$0xff]  ;;  %v831_v40 = vpack.c.bf16 %v745_v34, %v744_v30  ;;  %v451_v59 = vmul.f32 %v1914_v31, %v215_v38  ;;  %v233_v30 = vld [vmem:[#allocation2 + $0x518] sm:$0xff] }
  0x9e   :  { %v216_v42 = vld [vmem:[#allocation2 + $0x490] sm:$0xff] }
  0xa0   :  { %1335 = vmatpush.bf16.msra.mxu3 %v831_v40  ;;  %v243_v40 = vld [vmem:[#allocation2 + $0x568] sm:$0xff] }
  0xa7   :  { %v2051_v10 = vpop.f32.mrf.mxu1 }
  0xa8   :  { %v2053_v13 = vpop.f32.mrf.mxu0 }
  0xaa   :  { %948 = vmatmul.bf16.gmra.mxu1 %v568_v8  ;;  %1017 = vmatmul.bf16.gmra.mxu2 %v569_v9  ;;  %v442_v8 = vmul.f32 %v1914_v31, %v206_v60  ;;  %v434_v9 = vmul.f32 %v1917_v32, %v198_v62  ;;  %v815_v60 = vpack.c.bf16 %v713_v55, %v712_v54  ;;  %v761_v62 = vld [vmem:[%s2542_s1 + $0x418] sm:$0xff] }
  0xab   :  { %1086 = vmatmul.bf16.gmra.mxu3 %v570_v11  ;;  %1155 = vmatmul.bf16.gmra.mxu0 %v571_v12  ;;  %v443_v11 = vmul.f32 %v1917_v32, %v207_v0  ;;  %v435_v12 = vmul.f32 %v1920_v36, %v199_v1  ;;  %v460_v0 = vmul.f32 %v1914_v31, %v224_v39  ;;  %v234_v39 = vld [vmem:[#allocation2 + $0x520] sm:$0xff] }
  0xac   :  { %v586_v22 = vpack.c.bf16 %v442_v8, %v433_v7  ;;  %v452_v1 = vmul.f32 %v1917_v32, %v216_v42  ;;  %v839_v5 = vpack.c.bf16 %v761_v62, %v760_v56  ;;  %v462_v7 = vmul.f32 %v1920_v36, %v226_v48  ;;  %1197 = vmatpush.bf16.msra.mxu1 %v815_v60  ;;  %v235_v42 = vld [vmem:[#allocation2 + $0x528] sm:$0xff]  ;;  %v245_v48 = vld [vmem:[#allocation2 + $0x578] sm:$0xff]  ;;  %v726_v56 = vld [vmem:[%s2542_s1 + $0x300] sm:$0xff] }
  0xad   :  { %v2055_v14 = vpop.f32.mrf.mxu2  ;;  %v587_v4 = vpack.c.bf16 %v443_v11, %v434_v9  ;;  %v588_v25 = vpack.c.bf16 %v444_v15, %v435_v12  ;;  %v595_v15 = vpack.c.bf16 %v460_v0, %v451_v59  ;;  %v727_v59 = vld [vmem:[%s2542_s1 + $0x308] sm:$0xff]  ;;  %v742_v60 = vld [vmem:[%s2542_s1 + $0x380] sm:$0xff]  ;;  %v469_v62 = vmul.f32 %v1914_v31, %v233_v30 }
  0xae   :  { %v2057_v17 = vpop.f32.mrf.mxu3  ;;  %1404 = vmatpush.bf16.msra.mxu0 %v839_v5  ;;  %v478_v0 = vmul.f32 %v1914_v31, %v242_v33  ;;  %v479_v5 = vmul.f32 %v1917_v32, %v243_v40  ;;  %v711_v40 = vld [vmem:[%s2542_s1 + $0x288] sm:$0xff] }
  0xaf   :  { %v2059_v21 = vpop.f32.mrf.mxu1 }
  0xb0   :  { %v2061_v24 = vpop.f32.mrf.mxu0 }
  0xb5   :  { %v2083_v43 = vpop.f32.mrf.mxu2 }
  0xb6   :  { %v2085_v44 = vpop.f32.mrf.mxu3 }
  0xb7   :  { %v2093_v49 = vpop.f32.mrf.mxu1 }
  0xb8   :  { %v2095_v53 = vpop.f32.mrf.mxu0 }
  0xba   :  { %953 = vmatmul.bf16.gmra.mxu1 %v577_v45  ;;  %1022 = vmatmul.bf16.gmra.mxu2 %v578_v46  ;;  %v225_v45 = vld [vmem:[#allocation2 + $0x4d8] sm:$0xff] }
  0xbb   :  { %1091 = vmatmul.bf16.gmra.mxu3 %v579_v50  ;;  %1160 = vmatmul.bf16.gmra.mxu0 %v580_v51  ;;  %v217_v46 = vld [vmem:[#allocation2 + $0x498] sm:$0xff]  ;;  %v218_v50 = vld [vmem:[#allocation2 + $0x4a0] sm:$0xff]  ;;  %v227_v51 = vld [vmem:[#allocation2 + $0x4e8] sm:$0xff]  ;;  %v461_v3 = vmul.f32 %v1917_v32, %v225_v45 }
  0xbc   :  { %v453_v6 = vmul.f32 %v1920_v36, %v217_v46  ;;  %v454_v8 = vmul.f32 %v1923_v37, %v218_v50  ;;  %v463_v9 = vmul.f32 %v1923_v37, %v227_v51  ;;  %v244_v46 = vld [vmem:[#allocation2 + $0x570] sm:$0xff]  ;;  %v1498_v50 = vmul.f32 -1.442695, %v31_v28 }
  0xbd   :  { %v2103_v57 = vpop.f32.mrf.mxu2  ;;  %v596_v16 = vpack.c.bf16 %v461_v3, %v452_v1  ;;  %v470_v1 = vmul.f32 %v1917_v32, %v234_v39  ;;  %v743_v3 = vld [vmem:[%s2542_s1 + $0x388] sm:$0xff]  ;;  %v710_v39 = vld [vmem:[%s2542_s1 + $0x280] sm:$0xff] }
  0xbe   :  { %v2105_v58 = vpop.f32.mrf.mxu3  ;;  %1530 = vpow2.f32 %v1498_v50 }
  0xbf   :  { %v2107_v61 = vpop.f32.mrf.mxu1  ;;  %v605_v28 = vpack.c.bf16 %v479_v5, %v470_v1  ;;  %v253_v1 = vld [vmem:[#allocation2 + $0x5b8] sm:$0xff] }
  0xc0   :  { %v2109_v2 = vpop.f32.mrf.mxu0 }
  0xc5   :  { %v2119_v19 = vpop.f32.mrf.mxu2 }
  0xc6   :  { %v2121_v20 = vpop.f32.mrf.mxu3 }
  0xc7   :  { %v2123_v23 = vpop.f32.mrf.mxu1 }
  0xc8   :  { %v2125_v27 = vpop.f32.mrf.mxu0 }
  0xca   :  { %958 = vmatmul.bf16.gmra.mxu1 %v586_v22  ;;  %1027 = vmatmul.bf16.gmra.mxu2 %v587_v4  ;;  %v597_v22 = vpack.c.bf16 %v462_v7, %v453_v6  ;;  %v598_v4 = vpack.c.bf16 %v463_v9, %v454_v8  ;;  %v471_v6 = vmul.f32 %v1920_v36, %v235_v42  ;;  %v1531_v42 = vpop.eup %1530 }
  0xcb   :  { %1096 = vmatmul.bf16.gmra.mxu3 %v588_v25  ;;  %1165 = vmatmul.bf16.gmra.mxu0 %v589_v26  ;;  %v830_v7 = vpack.c.bf16 %v743_v3, %v742_v60  ;;  %v480_v9 = vmul.f32 %v1920_v36, %v244_v46  ;;  %v2213_v50 = vadd.f32 1.0, %v1531_v42 }
  0xcd   :  { %v2139_v35 = vpop.f32.mrf.mxu2  ;;  %1336 = vmatpush.bf16.msra.mxu3 %v830_v7  ;;  %v606_v30 = vpack.c.bf16 %v480_v9, %v471_v6  ;;  %v262_v6 = vld [vmem:[#allocation2 + $0x600] sm:$0xff]  ;;  %v263_v9 = vld [vmem:[#allocation2 + $0x608] sm:$0xff]  ;;  %1532 = vrcp.f32 %v2213_v50  ;;  %vm60_vm4 = vweird.f32 %v2213_v50 }
  0xce   :  { %v2141_v41 = vpop.f32.mrf.mxu3  ;;  %v254_v7 = vld [vmem:[#allocation2 + $0x5c0] sm:$0xff] }
  0xcf   :  { %v2143_v47 = vpop.f32.mrf.mxu1 }
  0xd0   :  { %v2145_v52 = vpop.f32.mrf.mxu0 }
  0xd5   :  { %v2167_v11 = vpop.f32.mrf.mxu2 }
  0xd6   :  { %v2169_v12 = vpop.f32.mrf.mxu3 }
  0xd7   :  { %v924_v18 = vpop.f32.mrf.mxu1 }
  0xd8   :  { %v925_v25 = vadd.f32 %v924_v18, %v2053_v13  ;;  %v1131_v26 = vpop.f32.mrf.mxu0  ;;  %v236_v13 = vld [vmem:[#allocation2 + $0x530] sm:$0xff] }
  0xda   :  { %963 = vmatmul.bf16.gmra.mxu1 %v595_v15  ;;  %1032 = vmatmul.bf16.gmra.mxu2 %v596_v16  ;;  %v472_v15 = vmul.f32 %v1923_v37, %v236_v13  ;;  %v481_v16 = vmul.f32 %v1923_v37, %v245_v48  ;;  %v759_v13 = vld [vmem:[%s2542_s1 + $0x408] sm:$0xff] }
  0xdb   :  { %1101 = vmatmul.bf16.gmra.mxu3 %v597_v22  ;;  %1170 = vmatmul.bf16.gmra.mxu0 %v598_v4 }
  0xdc   :  { %v607_v33 = vpack.c.bf16 %v481_v16, %v472_v15 }
  0xdd   :  { %v993_v29 = vpop.f32.mrf.mxu2 }
  0xde   :  { %v994_v34 = vadd.f32 %v993_v29, %v925_v25  ;;  %v1062_v38 = vpop.f32.mrf.mxu3  ;;  %v604_v25 = vpack.c.bf16 %v478_v0, %v469_v62  ;;  %v252_v62 = vld [vmem:[#allocation2 + $0x5b0] sm:$0xff]  ;;  %v261_v0 = vld [vmem:[#allocation2 + $0x5f8] sm:$0xff] }
  0xdf   :  { %v926_v45 = vpop.f32.mrf.mxu1 }
  0xe0   :  { %v1063_v51 = vadd.f32 %v1062_v38, %v994_v34  ;;  %v927_v54 = vadd.f32 %v926_v45, %v2061_v24  ;;  %v1133_v55 = vpop.f32.mrf.mxu0  ;;  %v822_v24 = vpack.c.bf16 %v727_v59, %v726_v56  ;;  %v814_v45 = vpack.c.bf16 %v711_v40, %v710_v39  ;;  %v251_v59 = vld [vmem:[#allocation2 + $0x5a8] sm:$0xff] }
  0xe1   :  { %v487_v15 = vmul.f32 %v1914_v31, %v251_v59 }
  0xe2   :  { %v2193_v8 = vadd.f32 %v1131_v26, %v1063_v51  ;;  %1267 = vmatpush.bf16.msra.mxu2 %v822_v24  ;;  %1198 = vmatpush.bf16.msra.mxu1 %v814_v45 }
  0xe5   :  { %v995_v18 = vpop.f32.mrf.mxu2 }
  0xe6   :  { %v996_v22 = vadd.f32 %v995_v18, %v927_v54  ;;  %v1064_v4 = vpop.f32.mrf.mxu3  ;;  %v488_v18 = vmul.f32 %v1917_v32, %v252_v62  ;;  %v269_v62 = vld [vmem:[#allocation2 + $0x638] sm:$0xff] }
  0xe7   :  { %v929_v29 = vpop.f32.mrf.mxu1 }
  0xe8   :  { %v1065_v34 = vadd.f32 %v1064_v4, %v996_v22  ;;  %v930_v26 = vadd.f32 %v929_v29, %v2095_v53  ;;  %v1136_v38 = vpop.f32.mrf.mxu0  ;;  %v758_v53 = vld [vmem:[%s2542_s1 + $0x400] sm:$0xff]  ;;  %v497_v22 = vmul.f32 %v1917_v32, %v261_v0  ;;  %v499_v29 = vmul.f32 %v1923_v37, %v263_v9 }
  0xe9   :  { %v838_v48 = vpack.c.bf16 %v759_v13, %v758_v53  ;;  %v278_v0 = vld [vmem:[#allocation2 + $0x680] sm:$0xff] }
  0xea   :  { %968 = vmatmul.bf16.gmra.mxu1 %v604_v25  ;;  %1037 = vmatmul.bf16.gmra.mxu2 %v605_v28  ;;  %v2205_v46 = vadd.f32 %v1133_v55, %v1065_v34  ;;  %v260_v55 = vld [vmem:[#allocation2 + $0x5f0] sm:$0xff]  ;;  %v489_v25 = vmul.f32 %v1920_v36, %v253_v1  ;;  %v490_v28 = vmul.f32 %v1923_v37, %v254_v7  ;;  %v270_v1 = vld [vmem:[#allocation2 + $0x640] sm:$0xff] }
  0xeb   :  { %1106 = vmatmul.bf16.gmra.mxu3 %v606_v30  ;;  %1175 = vmatmul.bf16.gmra.mxu0 %v607_v33  ;;  %v496_v16 = vmul.f32 %v1914_v31, %v260_v55  ;;  %v2227_v33 = vpop.eup %1532  ;;  %v614_v40 = vpack.c.bf16 %v497_v22, %v488_v18  ;;  %v505_v18 = vmul.f32 %v1914_v31, %v269_v62 }
  0xec   :  { %1405 = vmatpush.bf16.msra.mxu0 %v838_v48  ;;  %v616_v53 = vpack.c.bf16 %v499_v29, %v490_v28  ;;  %v514_v22 = vmul.f32 %v1914_v31, %v278_v0  ;;  %vm61_vm5 = vweird.f32 %v2227_v33  ;;  %v66_v31 = vand.u32 2147483648, %v2213_v50 }
  0xed   :  { %v998_v51 = vpop.f32.mrf.mxu2  ;;  %v613_v39 = vpack.c.bf16 %v496_v16, %v487_v15  ;;  %v272_v16 = vld [vmem:[#allocation2 + $0x650] sm:$0xff]  ;;  %vm2251_vm6 = vmor %vm60_vm4, %vm61_vm5 }
  0xee   :  { %v999_v54 = vadd.f32 %v998_v51, %v930_v26  ;;  %v1067_v56 = vpop.f32.mrf.mxu3  ;;  %v56_v51 = vmul.f32 %v2227_v33, %v2213_v50 }
  0xef   :  { %v931_v60 = vpop.f32.mrf.mxu1 }
  0xf0   :  { %v1068_v24 = vadd.f32 %v1067_v56, %v999_v54  ;;  %v932_v3 = vadd.f32 %v931_v60, %v2109_v2  ;;  %v1138_v5 = vpop.f32.mrf.mxu0  ;;  %v498_v2 = vmul.f32 %v1920_v36, %v262_v6  ;;  %v57_v59 = vsub.f32 1.0, %v56_v51  ;;  %v280_v6 = vld [vmem:[#allocation2 + $0x690] sm:$0xff] }
  0xf2   :  { %v2221_v4 = vadd.f32 %v1136_v38, %v1068_v24  ;;  %v615_v45 = vpack.c.bf16 %v498_v2, %v489_v25  ;;  %v506_v25 = vmul.f32 %v1917_v32, %v270_v1  ;;  %v58_v2 = vmul.f32 %v2227_v33, %v57_v59 }
  0xf3   :  { %v67_v59 = vor.u32 1.1754944e-38, %v66_v31  ;;  %v2262_v1 = vperm.slane %v1704_v63, 5 }
  0xf5   :  { %v1000_v30 = vpop.f32.mrf.mxu2 }
  0xf6   :  { %v1001_v34 = vadd.f32 %v1000_v30, %v932_v3  ;;  %v1069_v26 = vpop.f32.mrf.mxu3  ;;  %v279_v3 = vld [vmem:[#allocation2 + $0x688] sm:$0xff]  ;;  %v516_v30 = vmul.f32 %v1920_v36, %v280_v6  ;;  %v84_v6 = vld [vmem:[#allocation2 + $0x70] sm:$0xff] }
  0xf7   :  { %v934_v42 = vpop.f32.mrf.mxu1  ;;  %v515_v28 = vmul.f32 %v1917_v32, %v279_v3  ;;  %v64_v32 = vand.u32 2147483647, %v2213_v50 }
  0xf8   :  { %v1070_v38 = vadd.f32 %v1069_v26, %v1001_v34  ;;  %v935_v13 = vadd.f32 %v934_v42, %v2125_v27  ;;  %v1141_v48 = vpop.f32.mrf.mxu0  ;;  %v271_v27 = vld [vmem:[#allocation2 + $0x648] sm:$0xff] }
  0xf9   :  { %v507_v29 = vmul.f32 %v1920_v36, %v271_v27  ;;  %v622_v36 = vpack.c.bf16 %v514_v22, %v505_v18  ;;  %vm65_vm7 = vcmp.eq.f32.partialorder %v64_v32, 8.507059e+37  ;;  %v75_v27 = vld [vmem:[#allocation2 + $0x28] sm:$0xff] }
  0xfa   :  { %973 = vmatmul.bf16.gmra.mxu1 %v613_v39  ;;  %1042 = vmatmul.bf16.gmra.mxu2 %v614_v40  ;;  %v2232_v54 = vadd.f32 %v1138_v5, %v1070_v38  ;;  %v281_v5 = vld [vmem:[#allocation2 + $0x698] sm:$0xff]  ;;  %v59_v40 = vadd.f32 %v2227_v33, %v58_v2  ;;  %v78_v2 = vld [vmem:[#allocation2 + $0x40] sm:$0xff] }
  0xfb   :  { %1111 = vmatmul.bf16.gmra.mxu3 %v615_v45  ;;  %1180 = vmatmul.bf16.gmra.mxu0 %v616_v53  ;;  %v517_v26 = vmul.f32 %v1923_v37, %v281_v5  ;;  %v623_v53 = vpack.c.bf16 %v515_v28, %v506_v25  ;;  %v2268_v5 = vperm.slane %v1704_v63, 7  ;;  %v86_v25 = vld [vmem:[#allocation2 + $0x80] sm:$0xff]  ;;  %v87_v28 = vld [vmem:[#allocation2 + $0x88] sm:$0xff] }
  0xfd   :  { %v1003_v56 = vpop.f32.mrf.mxu2 }
  0xfe   :  { %v1004_v55 = vadd.f32 %v1003_v56, %v935_v13  ;;  %v1072_v60 = vpop.f32.mrf.mxu3  ;;  %v624_v13 = vpack.c.bf16 %v516_v30, %v507_v29  ;;  %v311_v29 = vmul.f32 %v2262_v1, %v75_v27  ;;  %v320_v30 = vmul.f32 %v2262_v1, %v84_v6  ;;  %v94_v6 = vld [vmem:[#allocation2 + $0xc0] sm:$0xff] }
  0xff   :  { %v936_v24 = vpop.f32.mrf.mxu1 }
 0x100   :  { %v1073_v7 = vadd.f32 %v1072_v60, %v1004_v55  ;;  %v937_v9 = vadd.f32 %v936_v24, %v2145_v52  ;;  %v1143_v15 = vpop.f32.mrf.mxu0  ;;  %v508_v52 = vmul.f32 %v1923_v37, %v272_v16  ;;  %v63_v55 = vsel %vm2251_vm6, %v2227_v33, %v59_v40  ;;  %v77_v16 = vld [vmem:[#allocation2 + $0x38] sm:$0xff] }
 0x101   :  { %v68_v62 = vsel %vm65_vm7, %v67_v59, %v63_v55  ;;  %v2265_v33 = vperm.slane %v1704_v63, 6  ;;  %v313_v63 = vmul.f32 %v2268_v5, %v77_v16  ;;  %v527_v38 = vpack.c.bf16 %v320_v30, %v311_v29 }
 0x102   :  { %v2242_v34 = vadd.f32 %v1141_v48, %v1073_v7  ;;  %v625_v48 = vpack.c.bf16 %v517_v26, %v508_v52 }
 0x105   :  { %v1005_v39 = vpop.f32.mrf.mxu2 }
 0x106   :  { %v1006_v42 = vadd.f32 %v1005_v39, %v937_v9  ;;  %v1074_v45 = vpop.f32.mrf.mxu3  ;;  %v76_v9 = vld [vmem:[#allocation2 + $0x30] sm:$0xff]  ;;  %v322_v39 = vmul.f32 %v2268_v5, %v86_v25 }
 0x107   :  { %v939_v37 = vpop.f32.mrf.mxu1  ;;  %v312_v52 = vmul.f32 %v2265_v33, %v76_v9  ;;  %v95_v9 = vld [vmem:[#allocation2 + $0xc8] sm:$0xff]  ;;  %v96_v25 = vld [vmem:[#allocation2 + $0xd0] sm:$0xff] }
 0x108   :  { %v1075_v51 = vadd.f32 %v1074_v45, %v1006_v42  ;;  %v1146_v56 = vpop.f32.mrf.mxu0  ;;  %v940_v60 = vadd.f32 %v939_v37, %v2051_v10  ;;  %v2270_v10 = vperm.slane %v68_v62, 0 }
 0x10a   :  { %978 = vmatmul.bf16.gmra.mxu1 %v622_v36  ;;  %1047 = vmatmul.bf16.gmra.mxu2 %v623_v53  ;;  %v2258_v50 = vadd.f32 %v1143_v15, %v1075_v51  ;;  %v85_v15 = vld [vmem:[#allocation2 + $0x78] sm:$0xff]  ;;  %v314_v40 = vmul.f32 %v2270_v10, %v78_v2  ;;  %v323_v32 = vmul.f32 %v2270_v10, %v87_v28 }
 0x10b   :  { %1116 = vmatmul.bf16.gmra.mxu3 %v624_v13  ;;  %1185 = vmatmul.bf16.gmra.mxu0 %v625_v48  ;;  %v321_v26 = vmul.f32 %v2265_v33, %v85_v15  ;;  %v529_v48 = vpack.c.bf16 %v322_v39, %v313_v63  ;;  %v105_v2 = vld [vmem:[#allocation2 + $0x118] sm:$0xff]  ;;  %v332_v63 = vmul.f32 %v2270_v10, %v96_v25  ;;  %v123_v25 = vld [vmem:[#allocation2 + $0x1a8] sm:$0xff] }
 0x10c   :  { %v530_v51 = vpack.c.bf16 %v323_v32, %v314_v40  ;;  %v341_v39 = vmul.f32 %v2270_v10, %v105_v2 }
 0x10d   :  { %v1008_v0 = vpop.f32.mrf.mxu2  ;;  %v528_v37 = vpack.c.bf16 %v321_v26, %v312_v52  ;;  %v331_v52 = vmul.f32 %v2268_v5, %v95_v9 }
 0x10e   :  { %v1009_v24 = vadd.f32 %v1008_v0, %v940_v60  ;;  %v1077_v3 = vpop.f32.mrf.mxu3 }
 0x10f   :  { %v941_v7 = vpop.f32.mrf.mxu1 }
 0x110   :  { %v1078_v18 = vadd.f32 %v1077_v3, %v1009_v24  ;;  %v1148_v22 = vpop.f32.mrf.mxu0  ;;  %v942_v42 = vadd.f32 %v941_v7, %v2059_v21  ;;  %v93_v24 = vld [vmem:[#allocation2 + $0xb8] sm:$0xff]  ;;  %v102_v3 = vld [vmem:[#allocation2 + $0x100] sm:$0xff]  ;;  %v103_v7 = vld [vmem:[#allocation2 + $0x108] sm:$0xff] }
 0x111   :  { %v338_v28 = vmul.f32 %v2262_v1, %v102_v3  ;;  %v339_v29 = vmul.f32 %v2265_v33, %v103_v7  ;;  %v112_v3 = vld [vmem:[#allocation2 + $0x150] sm:$0xff] }
 0x112   :  { %v2276_v31 = vadd.f32 %v1146_v56, %v1078_v18  ;;  %v104_v18 = vld [vmem:[#allocation2 + $0x110] sm:$0xff] }
 0x113   :  { %v340_v26 = vmul.f32 %v2268_v5, %v104_v18  ;;  %v114_v18 = vld [vmem:[#allocation2 + $0x160] sm:$0xff] }
 0x115   :  { %v1010_v45 = vpop.f32.mrf.mxu2 }
 0x116   :  { %v1011_v36 = vadd.f32 %v1010_v45, %v942_v42  ;;  %v1079_v53 = vpop.f32.mrf.mxu3 }
 0x117   :  { %v944_v13 = vpop.f32.mrf.mxu1 }
 0x118   :  { %v1080_v56 = vadd.f32 %v1079_v53, %v1011_v36  ;;  %v1151_v59 = vpop.f32.mrf.mxu0  ;;  %v945_v60 = vadd.f32 %v944_v13, %v2093_v49  ;;  %v330_v49 = vmul.f32 %v2265_v33, %v94_v6  ;;  %v539_v13 = vpack.c.bf16 %v341_v39, %v332_v63  ;;  %v113_v6 = vld [vmem:[#allocation2 + $0x158] sm:$0xff] }
 0x11a   :  { %1199 = vmatmul.bf16.vlgmr.msra.gmra.mxu1 %v527_v38  ;;  %1268 = vmatmul.bf16.vlgmr.msra.gmra.mxu2 %v528_v37  ;;  %v2283_v55 = vadd.f32 %v1148_v22, %v1080_v56  ;;  %v329_v22 = vmul.f32 %v2262_v1, %v93_v24  ;;  %v537_v53 = vpack.c.bf16 %v339_v29, %v330_v49 }
 0x11b   :  { %1337 = vmatmul.bf16.vlgmr.msra.gmra.mxu3 %v529_v48  ;;  %1406 = vmatmul.bf16.vlgmr.msra.gmra.mxu0 %v530_v51  ;;  %v538_v37 = vpack.c.bf16 %v340_v26, %v331_v52  ;;  %v349_v49 = vmul.f32 %v2268_v5, %v113_v6  ;;  %v350_v52 = vmul.f32 %v2270_v10, %v114_v18  ;;  %v141_v18 = vld [vmem:[#allocation2 + $0x238] sm:$0xff] }
 0x11c   :  { %v536_v36 = vpack.c.bf16 %v338_v28, %v329_v22  ;;  %v359_v26 = vmul.f32 %v2270_v10, %v123_v25 }
 0x11d   :  { %v1013_v62 = vpop.f32.mrf.mxu2 }
 0x11e   :  { %v1014_v21 = vadd.f32 %v1013_v62, %v945_v60  ;;  %v1082_v0 = vpop.f32.mrf.mxu3 }
 0x11f   :  { %v946_v27 = vpop.f32.mrf.mxu1 }
 0x120   :  { %v1083_v15 = vadd.f32 %v1082_v0, %v1014_v21  ;;  %v1153_v16 = vpop.f32.mrf.mxu0  ;;  %v947_v40 = vadd.f32 %v946_v27, %v2107_v61  ;;  %v111_v21 = vld [vmem:[#allocation2 + $0x148] sm:$0xff]  ;;  %v120_v0 = vld [vmem:[#allocation2 + $0x190] sm:$0xff]  ;;  %v121_v27 = vld [vmem:[#allocation2 + $0x198] sm:$0xff] }
 0x121   :  { %v356_v2 = vmul.f32 %v2262_v1, %v120_v0  ;;  %v357_v22 = vmul.f32 %v2265_v33, %v121_v27  ;;  %v130_v0 = vld [vmem:[#allocation2 + $0x1e0] sm:$0xff] }
 0x122   :  { %v2290_v30 = vadd.f32 %v1151_v59, %v1083_v15  ;;  %v122_v15 = vld [vmem:[#allocation2 + $0x1a0] sm:$0xff] }
 0x123   :  { %v358_v29 = vmul.f32 %v2268_v5, %v122_v15  ;;  %v132_v15 = vld [vmem:[#allocation2 + $0x1f0] sm:$0xff] }
 0x125   :  { %v1015_v32 = vpop.f32.mrf.mxu2 }
 0x126   :  { %v1016_v42 = vadd.f32 %v1015_v32, %v947_v40  ;;  %v1084_v45 = vpop.f32.mrf.mxu3 }
 0x127   :  { %v949_v38 = vpop.f32.mrf.mxu1 }
 0x128   :  { %v1085_v48 = vadd.f32 %v1084_v45, %v1016_v42  ;;  %v1156_v51 = vpop.f32.mrf.mxu0  ;;  %v950_v59 = vadd.f32 %v949_v38, %v2123_v23  ;;  %v348_v23 = vmul.f32 %v2265_v33, %v112_v3  ;;  %v548_v38 = vpack.c.bf16 %v359_v26, %v350_v52  ;;  %v131_v3 = vld [vmem:[#allocation2 + $0x1e8] sm:$0xff] }
 0x12a   :  { %1204 = vmatmul.bf16.gmra.mxu1 %v536_v36  ;;  %1273 = vmatmul.bf16.gmra.mxu2 %v537_v53  ;;  %v2297_v56 = vadd.f32 %v1153_v16, %v1085_v48  ;;  %v347_v16 = vmul.f32 %v2262_v1, %v111_v21  ;;  %v546_v45 = vpack.c.bf16 %v357_v22, %v348_v23 }
 0x12b   :  { %1342 = vmatmul.bf16.gmra.mxu3 %v538_v37  ;;  %1411 = vmatmul.bf16.gmra.mxu0 %v539_v13  ;;  %v547_v53 = vpack.c.bf16 %v358_v29, %v349_v49  ;;  %v367_v23 = vmul.f32 %v2268_v5, %v131_v3  ;;  %v368_v49 = vmul.f32 %v2270_v10, %v132_v15  ;;  %v159_v15 = vld [vmem:[#allocation2 + $0x2c8] sm:$0xff] }
 0x12c   :  { %v545_v42 = vpack.c.bf16 %v356_v2, %v347_v16  ;;  %v377_v29 = vmul.f32 %v2270_v10, %v141_v18 }
 0x12d   :  { %v1018_v60 = vpop.f32.mrf.mxu2 }
 0x12e   :  { %v1019_v61 = vadd.f32 %v1018_v60, %v950_v59  ;;  %v1087_v62 = vpop.f32.mrf.mxu3 }
 0x12f   :  { %v951_v24 = vpop.f32.mrf.mxu1 }
 0x130   :  { %v1088_v7 = vadd.f32 %v1087_v62, %v1019_v61  ;;  %v1158_v9 = vpop.f32.mrf.mxu0  ;;  %v952_v63 = vadd.f32 %v951_v24, %v2143_v47  ;;  %v129_v61 = vld [vmem:[#allocation2 + $0x1d8] sm:$0xff]  ;;  %v138_v62 = vld [vmem:[#allocation2 + $0x220] sm:$0xff]  ;;  %v139_v24 = vld [vmem:[#allocation2 + $0x228] sm:$0xff] }
 0x131   :  { %v374_v25 = vmul.f32 %v2262_v1, %v138_v62  ;;  %v375_v16 = vmul.f32 %v2265_v33, %v139_v24  ;;  %v148_v62 = vld [vmem:[#allocation2 + $0x270] sm:$0xff] }
 0x132   :  { %v2304_v28 = vadd.f32 %v1156_v51, %v1088_v7  ;;  %v140_v7 = vld [vmem:[#allocation2 + $0x230] sm:$0xff] }
 0x133   :  { %v376_v22 = vmul.f32 %v2268_v5, %v140_v7  ;;  %v150_v7 = vld [vmem:[#allocation2 + $0x280] sm:$0xff] }
 0x135   :  { %v1020_v39 = vpop.f32.mrf.mxu2 }
 0x136   :  { %v1021_v40 = vadd.f32 %v1020_v39, %v952_v63  ;;  %v1089_v32 = vpop.f32.mrf.mxu3 }
 0x137   :  { %v954_v36 = vpop.f32.mrf.mxu1 }
 0x138   :  { %v1090_v37 = vadd.f32 %v1089_v32, %v1021_v40  ;;  %v1161_v13 = vpop.f32.mrf.mxu0  ;;  %v955_v51 = vadd.f32 %v954_v36, %v2055_v14  ;;  %v366_v14 = vmul.f32 %v2265_v33, %v130_v0  ;;  %v557_v36 = vpack.c.bf16 %v377_v29, %v368_v49  ;;  %v149_v0 = vld [vmem:[#allocation2 + $0x278] sm:$0xff] }
 0x13a   :  { %1209 = vmatmul.bf16.gmra.mxu1 %v545_v42  ;;  %1278 = vmatmul.bf16.gmra.mxu2 %v546_v45  ;;  %v2311_v48 = vadd.f32 %v1158_v9, %v1090_v37  ;;  %v365_v9 = vmul.f32 %v2262_v1, %v129_v61  ;;  %v555_v32 = vpack.c.bf16 %v375_v16, %v366_v14 }
 0x13b   :  { %1347 = vmatmul.bf16.gmra.mxu3 %v547_v53  ;;  %1416 = vmatmul.bf16.gmra.mxu0 %v548_v38  ;;  %v556_v45 = vpack.c.bf16 %v376_v22, %v367_v23  ;;  %v385_v14 = vmul.f32 %v2268_v5, %v149_v0  ;;  %v386_v23 = vmul.f32 %v2270_v10, %v150_v7  ;;  %v177_v7 = vld [vmem:[#allocation2 + $0x358] sm:$0xff] }
 0x13c   :  { %v554_v40 = vpack.c.bf16 %v374_v25, %v365_v9  ;;  %v395_v22 = vmul.f32 %v2270_v10, %v159_v15 }
 0x13d   :  { %v1023_v59 = vpop.f32.mrf.mxu2 }
 0x13e   :  { %v1024_v47 = vadd.f32 %v1023_v59, %v955_v51  ;;  %v1092_v60 = vpop.f32.mrf.mxu3 }
 0x13f   :  { %v956_v21 = vpop.f32.mrf.mxu1 }
 0x140   :  { %v1093_v27 = vadd.f32 %v1092_v60, %v1024_v47  ;;  %v1163_v6 = vpop.f32.mrf.mxu0  ;;  %v957_v52 = vadd.f32 %v956_v21, %v2083_v43  ;;  %v147_v47 = vld [vmem:[#allocation2 + $0x268] sm:$0xff]  ;;  %v156_v60 = vld [vmem:[#allocation2 + $0x2b0] sm:$0xff]  ;;  %v157_v21 = vld [vmem:[#allocation2 + $0x2b8] sm:$0xff] }
 0x141   :  { %v392_v18 = vmul.f32 %v2262_v1, %v156_v60  ;;  %v393_v9 = vmul.f32 %v2265_v33, %v157_v21  ;;  %v166_v60 = vld [vmem:[#allocation2 + $0x300] sm:$0xff] }
 0x142   :  { %v2318_v2 = vadd.f32 %v1161_v13, %v1093_v27  ;;  %v158_v27 = vld [vmem:[#allocation2 + $0x2c0] sm:$0xff] }
 0x143   :  { %v394_v16 = vmul.f32 %v2268_v5, %v158_v27  ;;  %v168_v27 = vld [vmem:[#allocation2 + $0x310] sm:$0xff] }
 0x145   :  { %v1025_v26 = vpop.f32.mrf.mxu2 }
 0x146   :  { %v1026_v63 = vadd.f32 %v1025_v26, %v957_v52  ;;  %v1094_v39 = vpop.f32.mrf.mxu3 }
 0x147   :  { %v959_v42 = vpop.f32.mrf.mxu1 }
 0x148   :  { %v1095_v53 = vadd.f32 %v1094_v39, %v1026_v63  ;;  %v1166_v38 = vpop.f32.mrf.mxu0  ;;  %v960_v13 = vadd.f32 %v959_v42, %v2103_v57  ;;  %v384_v57 = vmul.f32 %v2265_v33, %v148_v62  ;;  %v566_v42 = vpack.c.bf16 %v395_v22, %v386_v23  ;;  %v167_v62 = vld [vmem:[#allocation2 + $0x308] sm:$0xff] }
 0x14a   :  { %1214 = vmatmul.bf16.gmra.mxu1 %v554_v40  ;;  %1283 = vmatmul.bf16.gmra.mxu2 %v555_v32  ;;  %v2325_v37 = vadd.f32 %v1163_v6, %v1095_v53  ;;  %v383_v6 = vmul.f32 %v2262_v1, %v147_v47  ;;  %v564_v39 = vpack.c.bf16 %v393_v9, %v384_v57 }
 0x14b   :  { %1352 = vmatmul.bf16.gmra.mxu3 %v556_v45  ;;  %1421 = vmatmul.bf16.gmra.mxu0 %v557_v36  ;;  %v565_v32 = vpack.c.bf16 %v394_v16, %v385_v14  ;;  %v403_v57 = vmul.f32 %v2268_v5, %v167_v62  ;;  %v404_v14 = vmul.f32 %v2270_v10, %v168_v27  ;;  %v195_v27 = vld [vmem:[#allocation2 + $0x3e8] sm:$0xff] }
 0x14c   :  { %v563_v63 = vpack.c.bf16 %v392_v18, %v383_v6  ;;  %v413_v16 = vmul.f32 %v2270_v10, %v177_v7 }
 0x14d   :  { %v1028_v51 = vpop.f32.mrf.mxu2 }
 0x14e   :  { %v1029_v43 = vadd.f32 %v1028_v51, %v960_v13  ;;  %v1097_v59 = vpop.f32.mrf.mxu3 }
 0x14f   :  { %v961_v61 = vpop.f32.mrf.mxu1 }
 0x150   :  { %v1098_v24 = vadd.f32 %v1097_v59, %v1029_v43  ;;  %v1168_v3 = vpop.f32.mrf.mxu0  ;;  %v962_v49 = vadd.f32 %v961_v61, %v2119_v19  ;;  %v165_v43 = vld [vmem:[#allocation2 + $0x2f8] sm:$0xff]  ;;  %v174_v59 = vld [vmem:[#allocation2 + $0x340] sm:$0xff]  ;;  %v175_v61 = vld [vmem:[#allocation2 + $0x348] sm:$0xff] }
 0x151   :  { %v410_v15 = vmul.f32 %v2262_v1, %v174_v59  ;;  %v411_v6 = vmul.f32 %v2265_v33, %v175_v61  ;;  %v184_v59 = vld [vmem:[#allocation2 + $0x390] sm:$0xff] }
 0x152   :  { %v2332_v25 = vadd.f32 %v1166_v38, %v1098_v24  ;;  %v176_v24 = vld [vmem:[#allocation2 + $0x350] sm:$0xff] }
 0x153   :  { %v412_v9 = vmul.f32 %v2268_v5, %v176_v24  ;;  %v186_v24 = vld [vmem:[#allocation2 + $0x3a0] sm:$0xff] }
 0x155   :  { %v1030_v29 = vpop.f32.mrf.mxu2 }
 0x156   :  { %v1031_v52 = vadd.f32 %v1030_v29, %v962_v49  ;;  %v1099_v26 = vpop.f32.mrf.mxu3 }
 0x157   :  { %v964_v40 = vpop.f32.mrf.mxu1 }
 0x158   :  { %v1100_v45 = vadd.f32 %v1099_v26, %v1031_v52  ;;  %v1171_v36 = vpop.f32.mrf.mxu0  ;;  %v965_v38 = vadd.f32 %v964_v40, %v2139_v35  ;;  %v402_v35 = vmul.f32 %v2265_v33, %v166_v60  ;;  %v575_v40 = vpack.c.bf16 %v413_v16, %v404_v14  ;;  %v185_v60 = vld [vmem:[#allocation2 + $0x398] sm:$0xff] }
 0x15a   :  { %1219 = vmatmul.bf16.gmra.mxu1 %v563_v63  ;;  %1288 = vmatmul.bf16.gmra.mxu2 %v564_v39  ;;  %v2339_v53 = vadd.f32 %v1168_v3, %v1100_v45  ;;  %v401_v3 = vmul.f32 %v2262_v1, %v165_v43  ;;  %v573_v26 = vpack.c.bf16 %v411_v6, %v402_v35 }
 0x15b   :  { %1357 = vmatmul.bf16.gmra.mxu3 %v565_v32  ;;  %1426 = vmatmul.bf16.gmra.mxu0 %v566_v42  ;;  %v574_v39 = vpack.c.bf16 %v412_v9, %v403_v57  ;;  %v421_v35 = vmul.f32 %v2268_v5, %v185_v60  ;;  %v422_v57 = vmul.f32 %v2270_v10, %v186_v24  ;;  %v213_v24 = vld [vmem:[#allocation2 + $0x478] sm:$0xff] }
 0x15c   :  { %v572_v52 = vpack.c.bf16 %v410_v15, %v401_v3  ;;  %v431_v9 = vmul.f32 %v2270_v10, %v195_v27 }
 0x15d   :  { %v1033_v13 = vpop.f32.mrf.mxu2 }
 0x15e   :  { %v1034_v19 = vadd.f32 %v1033_v13, %v965_v38  ;;  %v1102_v51 = vpop.f32.mrf.mxu3 }
 0x15f   :  { %v966_v47 = vpop.f32.mrf.mxu1 }
 0x160   :  { %v1103_v21 = vadd.f32 %v1102_v51, %v1034_v19  ;;  %v1173_v0 = vpop.f32.mrf.mxu0  ;;  %v967_v23 = vadd.f32 %v966_v47, %v2167_v11  ;;  %v183_v19 = vld [vmem:[#allocation2 + $0x388] sm:$0xff]  ;;  %v192_v51 = vld [vmem:[#allocation2 + $0x3d0] sm:$0xff]  ;;  %v193_v47 = vld [vmem:[#allocation2 + $0x3d8] sm:$0xff] }
 0x161   :  { %v428_v7 = vmul.f32 %v2262_v1, %v192_v51  ;;  %v429_v3 = vmul.f32 %v2265_v33, %v193_v47  ;;  %v202_v51 = vld [vmem:[#allocation2 + $0x420] sm:$0xff] }
 0x162   :  { %v2346_v18 = vadd.f32 %v1171_v36, %v1103_v21  ;;  %v194_v21 = vld [vmem:[#allocation2 + $0x3e0] sm:$0xff] }
 0x163   :  { %v430_v6 = vmul.f32 %v2268_v5, %v194_v21  ;;  %v204_v21 = vld [vmem:[#allocation2 + $0x430] sm:$0xff] }
 0x165   :  { %v1035_v22 = vpop.f32.mrf.mxu2 }
 0x166   :  { %v1036_v49 = vadd.f32 %v1035_v22, %v967_v23  ;;  %v1104_v29 = vpop.f32.mrf.mxu3 }
 0x167   :  { %v969_v63 = vpop.f32.mrf.mxu1 }
 0x168   :  { %v1105_v32 = vadd.f32 %v1104_v29, %v1036_v49  ;;  %v1176_v42 = vpop.f32.mrf.mxu0  ;;  %v970_v36 = vadd.f32 %v969_v63, %v2057_v17  ;;  %v420_v17 = vmul.f32 %v2265_v33, %v184_v59  ;;  %v584_v63 = vpack.c.bf16 %v431_v9, %v422_v57  ;;  %v203_v59 = vld [vmem:[#allocation2 + $0x428] sm:$0xff] }
 0x16a   :  { %1224 = vmatmul.bf16.gmra.mxu1 %v572_v52  ;;  %1293 = vmatmul.bf16.gmra.mxu2 %v573_v26  ;;  %v2353_v45 = vadd.f32 %v1173_v0, %v1105_v32  ;;  %v419_v0 = vmul.f32 %v2262_v1, %v183_v19  ;;  %v582_v29 = vpack.c.bf16 %v429_v3, %v420_v17 }
 0x16b   :  { %1362 = vmatmul.bf16.gmra.mxu3 %v574_v39  ;;  %1431 = vmatmul.bf16.gmra.mxu0 %v575_v40  ;;  %v583_v26 = vpack.c.bf16 %v430_v6, %v421_v35  ;;  %v439_v17 = vmul.f32 %v2268_v5, %v203_v59  ;;  %v440_v35 = vmul.f32 %v2270_v10, %v204_v21  ;;  %v231_v21 = vld [vmem:[#allocation2 + $0x508] sm:$0xff] }
 0x16c   :  { %v581_v49 = vpack.c.bf16 %v428_v7, %v419_v0  ;;  %v449_v6 = vmul.f32 %v2270_v10, %v213_v24 }
 0x16d   :  { %v1038_v38 = vpop.f32.mrf.mxu2 }
 0x16e   :  { %v1039_v11 = vadd.f32 %v1038_v38, %v970_v36  ;;  %v1107_v13 = vpop.f32.mrf.mxu3 }
 0x16f   :  { %v971_v43 = vpop.f32.mrf.mxu1 }
 0x170   :  { %v1108_v61 = vadd.f32 %v1107_v13, %v1039_v11  ;;  %v1178_v62 = vpop.f32.mrf.mxu0  ;;  %v972_v14 = vadd.f32 %v971_v43, %v2085_v44  ;;  %v201_v11 = vld [vmem:[#allocation2 + $0x418] sm:$0xff]  ;;  %v210_v13 = vld [vmem:[#allocation2 + $0x460] sm:$0xff]  ;;  %v211_v43 = vld [vmem:[#allocation2 + $0x468] sm:$0xff] }
 0x171   :  { %v446_v27 = vmul.f32 %v2262_v1, %v210_v13  ;;  %v447_v0 = vmul.f32 %v2265_v33, %v211_v43  ;;  %v220_v13 = vld [vmem:[#allocation2 + $0x4b0] sm:$0xff] }
 0x172   :  { %v2360_v15 = vadd.f32 %v1176_v42, %v1108_v61  ;;  %v212_v61 = vld [vmem:[#allocation2 + $0x470] sm:$0xff] }
 0x173   :  { %v448_v3 = vmul.f32 %v2268_v5, %v212_v61  ;;  %v222_v61 = vld [vmem:[#allocation2 + $0x4c0] sm:$0xff] }
 0x175   :  { %v1040_v16 = vpop.f32.mrf.mxu2 }
 0x176   :  { %v1041_v23 = vadd.f32 %v1040_v16, %v972_v14  ;;  %v1109_v22 = vpop.f32.mrf.mxu3 }
 0x177   :  { %v974_v52 = vpop.f32.mrf.mxu1 }
 0x178   :  { %v1110_v39 = vadd.f32 %v1109_v22, %v1041_v23  ;;  %v1181_v40 = vpop.f32.mrf.mxu0  ;;  %v975_v42 = vadd.f32 %v974_v52, %v2105_v58  ;;  %v438_v58 = vmul.f32 %v2265_v33, %v202_v51  ;;  %v593_v52 = vpack.c.bf16 %v449_v6, %v440_v35  ;;  %v221_v51 = vld [vmem:[#allocation2 + $0x4b8] sm:$0xff] }
 0x17a   :  { %1229 = vmatmul.bf16.gmra.mxu1 %v581_v49  ;;  %1298 = vmatmul.bf16.gmra.mxu2 %v582_v29  ;;  %v2367_v32 = vadd.f32 %v1178_v62, %v1110_v39  ;;  %v437_v62 = vmul.f32 %v2262_v1, %v201_v11  ;;  %v591_v22 = vpack.c.bf16 %v447_v0, %v438_v58 }
 0x17b   :  { %1367 = vmatmul.bf16.gmra.mxu3 %v583_v26  ;;  %1436 = vmatmul.bf16.gmra.mxu0 %v584_v63  ;;  %v592_v29 = vpack.c.bf16 %v448_v3, %v439_v17  ;;  %v457_v58 = vmul.f32 %v2268_v5, %v221_v51  ;;  %v458_v17 = vmul.f32 %v2270_v10, %v222_v61  ;;  %v249_v61 = vld [vmem:[#allocation2 + $0x598] sm:$0xff] }
 0x17c   :  { %v590_v23 = vpack.c.bf16 %v446_v27, %v437_v62  ;;  %v467_v3 = vmul.f32 %v2270_v10, %v231_v21 }
 0x17d   :  { %v1043_v36 = vpop.f32.mrf.mxu2 }
 0x17e   :  { %v1044_v44 = vadd.f32 %v1043_v36, %v975_v42  ;;  %v1112_v38 = vpop.f32.mrf.mxu3 }
 0x17f   :  { %v976_v19 = vpop.f32.mrf.mxu1 }
 0x180   :  { %v1113_v47 = vadd.f32 %v1112_v38, %v1044_v44  ;;  %v1183_v60 = vpop.f32.mrf.mxu0  ;;  %v977_v57 = vadd.f32 %v976_v19, %v2121_v20  ;;  %v219_v44 = vld [vmem:[#allocation2 + $0x4a8] sm:$0xff]  ;;  %v228_v38 = vld [vmem:[#allocation2 + $0x4f0] sm:$0xff]  ;;  %v229_v19 = vld [vmem:[#allocation2 + $0x4f8] sm:$0xff] }
 0x181   :  { %v464_v24 = vmul.f32 %v2262_v1, %v228_v38  ;;  %v465_v62 = vmul.f32 %v2265_v33, %v229_v19  ;;  %v238_v38 = vld [vmem:[#allocation2 + $0x540] sm:$0xff] }
 0x182   :  { %v2374_v7 = vadd.f32 %v1181_v40, %v1113_v47  ;;  %v230_v47 = vld [vmem:[#allocation2 + $0x500] sm:$0xff] }
 0x183   :  { %v466_v0 = vmul.f32 %v2268_v5, %v230_v47  ;;  %v240_v47 = vld [vmem:[#allocation2 + $0x550] sm:$0xff] }
 0x185   :  { %v1045_v9 = vpop.f32.mrf.mxu2 }
 0x186   :  { %v1046_v14 = vadd.f32 %v1045_v9, %v977_v57  ;;  %v1114_v16 = vpop.f32.mrf.mxu3 }
 0x187   :  { %v979_v49 = vpop.f32.mrf.mxu1 }
 0x188   :  { %v1115_v26 = vadd.f32 %v1114_v16, %v1046_v14  ;;  %v1186_v63 = vpop.f32.mrf.mxu0  ;;  %v980_v40 = vadd.f32 %v979_v49, %v2141_v41  ;;  %v456_v41 = vmul.f32 %v2265_v33, %v220_v13  ;;  %v602_v49 = vpack.c.bf16 %v467_v3, %v458_v17  ;;  %v239_v13 = vld [vmem:[#allocation2 + $0x548] sm:$0xff] }
 0x18a   :  { %1234 = vmatmul.bf16.gmra.mxu1 %v590_v23  ;;  %1303 = vmatmul.bf16.gmra.mxu2 %v591_v22  ;;  %v2381_v39 = vadd.f32 %v1183_v60, %v1115_v26  ;;  %v455_v60 = vmul.f32 %v2262_v1, %v219_v44  ;;  %v600_v16 = vpack.c.bf16 %v465_v62, %v456_v41 }
 0x18b   :  { %1372 = vmatmul.bf16.gmra.mxu3 %v592_v29  ;;  %1441 = vmatmul.bf16.gmra.mxu0 %v593_v52  ;;  %v601_v22 = vpack.c.bf16 %v466_v0, %v457_v58  ;;  %v475_v41 = vmul.f32 %v2268_v5, %v239_v13  ;;  %v476_v58 = vmul.f32 %v2270_v10, %v240_v47 }
 0x18c   :  { %v599_v14 = vpack.c.bf16 %v464_v24, %v455_v60  ;;  %v474_v60 = vmul.f32 %v2265_v33, %v238_v38  ;;  %v485_v0 = vmul.f32 %v2270_v10, %v249_v61  ;;  %v257_v38 = vld [vmem:[#allocation2 + $0x5d8] sm:$0xff] }
 0x18d   :  { %v1048_v42 = vpop.f32.mrf.mxu2 }
 0x18e   :  { %v1049_v20 = vadd.f32 %v1048_v42, %v980_v40  ;;  %v1117_v36 = vpop.f32.mrf.mxu3 }
 0x18f   :  { %v981_v11 = vpop.f32.mrf.mxu1 }
 0x190   :  { %v1118_v43 = vadd.f32 %v1117_v36, %v1049_v20  ;;  %v1188_v59 = vpop.f32.mrf.mxu0  ;;  %v982_v35 = vadd.f32 %v981_v11, %v2169_v12  ;;  %v237_v20 = vld [vmem:[#allocation2 + $0x538] sm:$0xff]  ;;  %v246_v36 = vld [vmem:[#allocation2 + $0x580] sm:$0xff]  ;;  %v247_v11 = vld [vmem:[#allocation2 + $0x588] sm:$0xff] }
 0x191   :  { %v483_v24 = vmul.f32 %v2265_v33, %v247_v11 }
 0x192   :  { %v2388_v27 = vadd.f32 %v1186_v63, %v1118_v43  ;;  %v248_v43 = vld [vmem:[#allocation2 + $0x590] sm:$0xff] }
 0x193   :  { %v484_v62 = vmul.f32 %v2268_v5, %v248_v43  ;;  %v267_v43 = vld [vmem:[#allocation2 + $0x628] sm:$0xff] }
 0x195   :  { %v1050_v6 = vpop.f32.mrf.mxu2 }
 0x196   :  { %v1051_v57 = vadd.f32 %v1050_v6, %v982_v35  ;;  %v1119_v9 = vpop.f32.mrf.mxu3 }
 0x197   :  { %v1200_v23 = vpop.f32.mrf.mxu1 }
 0x198   :  { %v1120_v29 = vadd.f32 %v1119_v9, %v1051_v57  ;;  %v1407_v52 = vpop.f32.mrf.mxu0  ;;  %v1201_v63 = vadd.f32 %v1200_v23, %v2193_v8  ;;  %v482_v8 = vmul.f32 %v2262_v1, %v246_v36  ;;  %v609_v9 = vpack.c.bf16 %v483_v24, %v474_v60  ;;  %v256_v36 = vld [vmem:[#allocation2 + $0x5d0] sm:$0xff] }
 0x199   :  { %v611_v23 = vpack.c.bf16 %v485_v0, %v476_v58 }
 0x19a   :  { %1239 = vmatmul.bf16.gmra.mxu1 %v599_v14  ;;  %1308 = vmatmul.bf16.gmra.mxu2 %v600_v16  ;;  %v2395_v26 = vadd.f32 %v1188_v59, %v1120_v29  ;;  %v473_v59 = vmul.f32 %v2262_v1, %v237_v20  ;;  %v610_v16 = vpack.c.bf16 %v484_v62, %v475_v41 }
 0x19b   :  { %1377 = vmatmul.bf16.gmra.mxu3 %v601_v22  ;;  %1446 = vmatmul.bf16.gmra.mxu0 %v602_v49  ;;  %v503_v41 = vmul.f32 %v2270_v10, %v267_v43 }
 0x19c   :  { %v608_v57 = vpack.c.bf16 %v482_v8, %v473_v59  ;;  %v493_v8 = vmul.f32 %v2268_v5, %v257_v38  ;;  %v276_v38 = vld [vmem:[#allocation2 + $0x670] sm:$0xff] }
 0x19d   :  { %v1269_v40 = vpop.f32.mrf.mxu2 }
 0x19e   :  { %v1270_v12 = vadd.f32 %v1269_v40, %v1201_v63  ;;  %v1338_v42 = vpop.f32.mrf.mxu3 }
 0x19f   :  { %v1202_v44 = vpop.f32.mrf.mxu1 }
 0x1a0   :  { %v1339_v19 = vadd.f32 %v1338_v42, %v1270_v12  ;;  %v1409_v51 = vpop.f32.mrf.mxu0  ;;  %v1203_v17 = vadd.f32 %v1202_v44, %v2205_v46  ;;  %v255_v12 = vld [vmem:[#allocation2 + $0x5c8] sm:$0xff]  ;;  %v264_v42 = vld [vmem:[#allocation2 + $0x610] sm:$0xff]  ;;  %v265_v44 = vld [vmem:[#allocation2 + $0x618] sm:$0xff] }
 0x1a1   :  { %v491_v47 = vmul.f32 %v2262_v1, %v255_v12  ;;  %v500_v59 = vmul.f32 %v2262_v1, %v264_v42  ;;  %v283_v12 = vld [vmem:[#allocation2 + $0x6a8] sm:$0xff] }
 0x1a2   :  { %v1408_v21 = vadd.f32 %v1407_v52, %v1339_v19  ;;  %v266_v19 = vld [vmem:[#allocation2 + $0x620] sm:$0xff]  ;;  %v275_v42 = vld [vmem:[#allocation2 + $0x668] sm:$0xff]  ;;  %v519_v43 = vmul.f32 %v2265_v33, %v283_v12 }
 0x1a3   :  { %v502_v60 = vmul.f32 %v2268_v5, %v266_v19 }
 0x1a4   :  { %1468 = vst.msk [vmem:[%s2544_s3] sm:$0xff] %vm1467_vm8, %v1408_v21  ;;  %v501_v21 = vmul.f32 %v2265_v33, %v265_v44  ;;  %v284_v44 = vld [vmem:[#allocation2 + $0x6b0] sm:$0xff] }
 0x1a5   :  { %v1271_v3 = vpop.f32.mrf.mxu2 }
 0x1a6   :  { %v1272_v35 = vadd.f32 %v1271_v3, %v1203_v17  ;;  %v1340_v6 = vpop.f32.mrf.mxu3  ;;  %v617_v3 = vpack.c.bf16 %v500_v59, %v491_v47  ;;  %v511_v47 = vmul.f32 %v2268_v5, %v275_v42  ;;  %v512_v59 = vmul.f32 %v2270_v10, %v276_v38 }
 0x1a7   :  { %v1205_v14 = vpop.f32.mrf.mxu1 }
 0x1a8   :  { %v1341_v22 = vadd.f32 %v1340_v6, %v1272_v35  ;;  %v1412_v49 = vpop.f32.mrf.mxu0  ;;  %v1206_v46 = vadd.f32 %v1205_v14, %v2221_v4  ;;  %v492_v4 = vmul.f32 %v2265_v33, %v256_v36 }
 0x1aa   :  { %v1410_v29 = vadd.f32 %v1409_v51, %v1341_v22  ;;  %1244 = vmatmul.bf16.gmra.mxu1 %v608_v57  ;;  %1313 = vmatmul.bf16.gmra.mxu2 %v609_v9  ;;  %v258_v51 = vld [vmem:[#allocation2 + $0x5e0] sm:$0xff]  ;;  %v618_v35 = vpack.c.bf16 %v501_v21, %v492_v4  ;;  %v619_v57 = vpack.c.bf16 %v502_v60, %v493_v8 }
 0x1ab   :  { %1382 = vmatmul.bf16.gmra.mxu3 %v610_v16  ;;  %1451 = vmatmul.bf16.gmra.mxu0 %v611_v23  ;;  %v494_v24 = vmul.f32 %v2270_v10, %v258_v51 }
 0x1ac   :  { %1469 = vst.msk [vmem:[%s2544_s3 + $0x8] sm:$0xff] %vm1467_vm8, %v1410_v29 }
 0x1ad   :  { %v1274_v52 = vpop.f32.mrf.mxu2  ;;  %v620_v9 = vpack.c.bf16 %v503_v41, %v494_v24 }
 0x1ae   :  { %v1275_v63 = vadd.f32 %v1274_v52, %v1206_v46  ;;  %v1343_v40 = vpop.f32.mrf.mxu3  ;;  %v273_v46 = vld [vmem:[#allocation2 + $0x658] sm:$0xff]  ;;  %v282_v52 = vld [vmem:[#allocation2 + $0x6a0] sm:$0xff] }
 0x1af   :  { %v1207_v20 = vpop.f32.mrf.mxu1  ;;  %v518_v51 = vmul.f32 %v2262_v1, %v282_v52 }
 0x1b0   :  { %v1344_v11 = vadd.f32 %v1343_v40, %v1275_v63  ;;  %v1414_v13 = vpop.f32.mrf.mxu0  ;;  %v1208_v62 = vadd.f32 %v1207_v20, %v2232_v54  ;;  %v274_v40 = vld [vmem:[#allocation2 + $0x660] sm:$0xff] }
 0x1b2   :  { %v1413_v61 = vadd.f32 %v1412_v49, %v1344_v11  ;;  %v285_v11 = vld [vmem:[#allocation2 + $0x6b8] sm:$0xff] }
 0x1b3   :  { %v521_v4 = vmul.f32 %v2270_v10, %v285_v11 }
 0x1b4   :  { %1470 = vst.msk [vmem:[%s2544_s3 + $0x10] sm:$0xff] %vm1467_vm8, %v1413_v61  ;;  %v520_v61 = vmul.f32 %v2268_v5, %v284_v44 }
 0x1b5   :  { %v1276_v58 = vpop.f32.mrf.mxu2 }
 0x1b6   :  { %v1277_v0 = vadd.f32 %v1276_v58, %v1208_v62  ;;  %v1345_v17 = vpop.f32.mrf.mxu3  ;;  %v628_v62 = vpack.c.bf16 %v520_v61, %v511_v47  ;;  %v629_v58 = vpack.c.bf16 %v521_v4, %v512_v59 }
 0x1b7   :  { %v1210_v6 = vpop.f32.mrf.mxu1 }
 0x1b8   :  { %v1346_v14 = vadd.f32 %v1345_v17, %v1277_v0  ;;  %v1417_v16 = vpop.f32.mrf.mxu0  ;;  %v1211_v54 = vadd.f32 %v1210_v6, %v2242_v34  ;;  %v510_v34 = vmul.f32 %v2265_v33, %v274_v40 }
 0x1ba   :  { %v1415_v23 = vadd.f32 %v1414_v13, %v1346_v14  ;;  %1249 = vmatmul.bf16.gmra.mxu1 %v617_v3  ;;  %1318 = vmatmul.bf16.gmra.mxu2 %v618_v35  ;;  %v509_v13 = vmul.f32 %v2262_v1, %v273_v46  ;;  %v627_v33 = vpack.c.bf16 %v519_v43, %v510_v34 }
 0x1bb   :  { %1387 = vmatmul.bf16.gmra.mxu3 %v619_v57  ;;  %1456 = vmatmul.bf16.gmra.mxu0 %v620_v9 }
 0x1bc   :  { %1471 = vst.msk [vmem:[%s2544_s3 + $0x18] sm:$0xff] %vm1467_vm8, %v1415_v23  ;;  %v626_v24 = vpack.c.bf16 %v518_v51, %v509_v13 }
 0x1bd   :  { %v1279_v22 = vpop.f32.mrf.mxu2 }
 0x1be   :  { %v1280_v49 = vadd.f32 %v1279_v22, %v1211_v54  ;;  %v1348_v29 = vpop.f32.mrf.mxu3 }
 0x1bf   :  { %v1212_v63 = vpop.f32.mrf.mxu1 }
 0x1c0   :  { %v1349_v20 = vadd.f32 %v1348_v29, %v1280_v49  ;;  %v1419_v36 = vpop.f32.mrf.mxu0  ;;  %v1213_v21 = vadd.f32 %v1212_v63, %v2258_v50 }
 0x1c2   :  { %v1418_v19 = vadd.f32 %v1417_v16, %v1349_v20 }
 0x1c4   :  { %1472 = vst.msk [vmem:[%s2544_s3 + $0x20] sm:$0xff] %vm1467_vm8, %v1418_v19 }
 0x1c5   :  { %v1281_v1 = vpop.f32.mrf.mxu2 }
 0x1c6   :  { %v1282_v8 = vadd.f32 %v1281_v1, %v1213_v21  ;;  %v1350_v60 = vpop.f32.mrf.mxu3 }
 0x1c7   :  { %v1215_v41 = vpop.f32.mrf.mxu1 }
 0x1c8   :  { %v1351_v5 = vadd.f32 %v1350_v60, %v1282_v8  ;;  %v1422_v0 = vpop.f32.mrf.mxu0  ;;  %v1216_v50 = vadd.f32 %v1215_v41, %v2276_v31 }
 0x1ca   :  { %v1420_v17 = vadd.f32 %v1419_v36, %v1351_v5  ;;  %1254 = vmatmul.bf16.gmra.mxu1 %v626_v24  ;;  %1323 = vmatmul.bf16.gmra.mxu2 %v627_v33 }
 0x1cb   :  { %1392 = vmatmul.bf16.gmra.mxu3 %v628_v62  ;;  %1461 = vmatmul.bf16.gmra.mxu0 %v629_v58 }
 0x1cc   :  { %1473 = vst.msk [vmem:[%s2544_s3 + $0x28] sm:$0xff] %vm1467_vm8, %v1420_v17 }
 0x1cd   :  { %v1284_v10 = vpop.f32.mrf.mxu2 }
 0x1ce   :  { %v1285_v3 = vadd.f32 %v1284_v10, %v1216_v50  ;;  %v1353_v35 = vpop.f32.mrf.mxu3 }
 0x1cf   :  { %v1217_v6 = vpop.f32.mrf.mxu1 }
 0x1d0   :  { %v1354_v57 = vadd.f32 %v1353_v35, %v1285_v3  ;;  %v1424_v9 = vpop.f32.mrf.mxu0  ;;  %v1218_v16 = vadd.f32 %v1217_v6, %v2283_v55 }
 0x1d2   :  { %v1423_v14 = vadd.f32 %v1422_v0, %v1354_v57 }
 0x1d4   :  { %1474 = vst.msk [vmem:[%s2544_s3 + $0x30] sm:$0xff] %vm1467_vm8, %v1423_v14 }
 0x1d5   :  { %v1286_v23 = vpop.f32.mrf.mxu2 }
 0x1d6   :  { %v1287_v54 = vadd.f32 %v1286_v23, %v1218_v16  ;;  %v1355_v22 = vpop.f32.mrf.mxu3 }
 0x1d7   :  { %v1220_v49 = vpop.f32.mrf.mxu1 }
 0x1d8   :  { %v1356_v29 = vadd.f32 %v1355_v22, %v1287_v54  ;;  %v1427_v31 = vpop.f32.mrf.mxu0  ;;  %v1221_v52 = vadd.f32 %v1220_v49, %v2290_v30 }
 0x1da   :  { %v1425_v46 = vadd.f32 %v1424_v9, %v1356_v29 }
 0x1dc   :  { %1475 = vst.msk [vmem:[%s2544_s3 + $0x38] sm:$0xff] %vm1467_vm8, %v1425_v46 }
 0x1dd   :  { %v1289_v63 = vpop.f32.mrf.mxu2 }
 0x1de   :  { %v1290_v40 = vadd.f32 %v1289_v63, %v1221_v52  ;;  %v1358_v12 = vpop.f32.mrf.mxu3 }
 0x1df   :  { %v1222_v42 = vpop.f32.mrf.mxu1 }
 0x1e0   :  { %v1359_v20 = vadd.f32 %v1358_v12, %v1290_v40  ;;  %v1429_v55 = vpop.f32.mrf.mxu0  ;;  %v1223_v44 = vadd.f32 %v1222_v42, %v2297_v56 }
 0x1e2   :  { %v1428_v36 = vadd.f32 %v1427_v31, %v1359_v20 }
 0x1e4   :  { %1476 = vst.msk [vmem:[%s2544_s3 + $0x40] sm:$0xff] %vm1467_vm8, %v1428_v36 }
 0x1e5   :  { %v1291_v38 = vpop.f32.mrf.mxu2 }
 0x1e6   :  { %v1292_v11 = vadd.f32 %v1291_v38, %v1223_v44  ;;  %v1360_v13 = vpop.f32.mrf.mxu3 }
 0x1e7   :  { %v1225_v19 = vpop.f32.mrf.mxu1 }
 0x1e8   :  { %v1361_v51 = vadd.f32 %v1360_v13, %v1292_v11  ;;  %v1432_v30 = vpop.f32.mrf.mxu0  ;;  %v1226_v43 = vadd.f32 %v1225_v19, %v2304_v28 }
 0x1ea   :  { %v1430_v34 = vadd.f32 %v1429_v55, %v1361_v51 }
 0x1ec   :  { %1477 = vst.msk [vmem:[%s2544_s3 + $0x48] sm:$0xff] %vm1467_vm8, %v1430_v34 }
 0x1ed   :  { %v1294_v47 = vpop.f32.mrf.mxu2 }
 0x1ee   :  { %v1295_v61 = vadd.f32 %v1294_v47, %v1226_v43  ;;  %v1363_v59 = vpop.f32.mrf.mxu3 }
 0x1ef   :  { %v1227_v4 = vpop.f32.mrf.mxu1 }
 0x1f0   :  { %v1364_v21 = vadd.f32 %v1363_v59, %v1295_v61  ;;  %v1434_v56 = vpop.f32.mrf.mxu0  ;;  %v1228_v8 = vadd.f32 %v1227_v4, %v2311_v48 }
 0x1f2   :  { %v1433_v1 = vadd.f32 %v1432_v30, %v1364_v21 }
 0x1f4   :  { %1478 = vst.msk [vmem:[%s2544_s3 + $0x50] sm:$0xff] %vm1467_vm8, %v1433_v1 }
 0x1f5   :  { %v1296_v60 = vpop.f32.mrf.mxu2 }
 0x1f6   :  { %v1297_v24 = vadd.f32 %v1296_v60, %v1228_v8  ;;  %v1365_v33 = vpop.f32.mrf.mxu3 }
 0x1f7   :  { %v1230_v41 = vpop.f32.mrf.mxu1 }
 0x1f8   :  { %v1366_v62 = vadd.f32 %v1365_v33, %v1297_v24  ;;  %v1437_v28 = vpop.f32.mrf.mxu0  ;;  %v1231_v5 = vadd.f32 %v1230_v41, %v2318_v2 }
 0x1fa   :  { %v1435_v58 = vadd.f32 %v1434_v56, %v1366_v62 }
 0x1fc   :  { %1479 = vst.msk [vmem:[%s2544_s3 + $0x58] sm:$0xff] %vm1467_vm8, %v1435_v58 }
 0x1fd   :  { %v1299_v0 = vpop.f32.mrf.mxu2 }
 0x1fe   :  { %v1300_v17 = vadd.f32 %v1299_v0, %v1231_v5  ;;  %v1368_v50 = vpop.f32.mrf.mxu3 }
 0x1ff   :  { %v1232_v10 = vpop.f32.mrf.mxu1 }
 0x200   :  { %v1369_v3 = vadd.f32 %v1368_v50, %v1300_v17  ;;  %v1439_v48 = vpop.f32.mrf.mxu0  ;;  %v1233_v6 = vadd.f32 %v1232_v10, %v2325_v37 }
 0x202   :  { %v1438_v35 = vadd.f32 %v1437_v28, %v1369_v3 }
 0x204   :  { %1480 = vst.msk [vmem:[%s2544_s3 + $0x60] sm:$0xff] %vm1467_vm8, %v1438_v35 }
 0x205   :  { %v1301_v57 = vpop.f32.mrf.mxu2 }
 0x206   :  { %v1302_v9 = vadd.f32 %v1301_v57, %v1233_v6  ;;  %v1370_v14 = vpop.f32.mrf.mxu3 }
 0x207   :  { %v1235_v16 = vpop.f32.mrf.mxu1 }
 0x208   :  { %v1371_v23 = vadd.f32 %v1370_v14, %v1302_v9  ;;  %v1442_v2 = vpop.f32.mrf.mxu0  ;;  %v1236_v22 = vadd.f32 %v1235_v16, %v2332_v25 }
 0x20a   :  { %v1440_v54 = vadd.f32 %v1439_v48, %v1371_v23 }
 0x20c   :  { %1481 = vst.msk [vmem:[%s2544_s3 + $0x68] sm:$0xff] %vm1467_vm8, %v1440_v54 }
 0x20d   :  { %v1304_v49 = vpop.f32.mrf.mxu2 }
 0x20e   :  { %v1305_v29 = vadd.f32 %v1304_v49, %v1236_v22  ;;  %v1373_v31 = vpop.f32.mrf.mxu3 }
 0x20f   :  { %v1237_v46 = vpop.f32.mrf.mxu1 }
 0x210   :  { %v1374_v52 = vadd.f32 %v1373_v31, %v1305_v29  ;;  %v1444_v37 = vpop.f32.mrf.mxu0  ;;  %v1238_v40 = vadd.f32 %v1237_v46, %v2339_v53 }
 0x212   :  { %v1443_v63 = vadd.f32 %v1442_v2, %v1374_v52 }
 0x214   :  { %1482 = vst.msk [vmem:[%s2544_s3 + $0x70] sm:$0xff] %vm1467_vm8, %v1443_v63 }
 0x215   :  { %v1306_v12 = vpop.f32.mrf.mxu2 }
 0x216   :  { %v1307_v42 = vadd.f32 %v1306_v12, %v1238_v40  ;;  %v1375_v20 = vpop.f32.mrf.mxu3 }
 0x217   :  { %v1240_v55 = vpop.f32.mrf.mxu1 }
 0x218   :  { %v1376_v36 = vadd.f32 %v1375_v20, %v1307_v42  ;;  %v1447_v25 = vpop.f32.mrf.mxu0  ;;  %v1241_v38 = vadd.f32 %v1240_v55, %v2346_v18 }
 0x21a   :  { %v1445_v44 = vadd.f32 %v1444_v37, %v1376_v36 }
 0x21c   :  { %1483 = vst.msk [vmem:[%s2544_s3 + $0x78] sm:$0xff] %vm1467_vm8, %v1445_v44 }
 0x21d   :  { %v1309_v11 = vpop.f32.mrf.mxu2 }
 0x21e   :  { %v1310_v13 = vadd.f32 %v1309_v11, %v1241_v38  ;;  %v1378_v19 = vpop.f32.mrf.mxu3 }
 0x21f   :  { %v1242_v51 = vpop.f32.mrf.mxu1 }
 0x220   :  { %v1379_v30 = vadd.f32 %v1378_v19, %v1310_v13  ;;  %v1449_v53 = vpop.f32.mrf.mxu0  ;;  %v1243_v43 = vadd.f32 %v1242_v51, %v2353_v45 }
 0x222   :  { %v1448_v34 = vadd.f32 %v1447_v25, %v1379_v30 }
 0x224   :  { %1484 = vst.msk [vmem:[%s2544_s3 + $0x80] sm:$0xff] %vm1467_vm8, %v1448_v34 }
 0x225   :  { %v1311_v47 = vpop.f32.mrf.mxu2 }
 0x226   :  { %v1312_v61 = vadd.f32 %v1311_v47, %v1243_v43  ;;  %v1380_v59 = vpop.f32.mrf.mxu3 }
 0x227   :  { %v1245_v4 = vpop.f32.mrf.mxu1 }
 0x228   :  { %v1381_v21 = vadd.f32 %v1380_v59, %v1312_v61  ;;  %v1452_v18 = vpop.f32.mrf.mxu0  ;;  %v1246_v1 = vadd.f32 %v1245_v4, %v2360_v15 }
 0x22a   :  { %v1450_v56 = vadd.f32 %v1449_v53, %v1381_v21 }
 0x22c   :  { %1485 = vst.msk [vmem:[%s2544_s3 + $0x88] sm:$0xff] %vm1467_vm8, %v1450_v56 }
 0x22d   :  { %v1314_v8 = vpop.f32.mrf.mxu2 }
 0x22e   :  { %v1315_v60 = vadd.f32 %v1314_v8, %v1246_v1  ;;  %v1383_v24 = vpop.f32.mrf.mxu3 }
 0x22f   :  { %v1247_v33 = vpop.f32.mrf.mxu1 }
 0x230   :  { %v1384_v41 = vadd.f32 %v1383_v24, %v1315_v60  ;;  %v1454_v45 = vpop.f32.mrf.mxu0  ;;  %v1248_v28 = vadd.f32 %v1247_v33, %v2367_v32 }
 0x232   :  { %v1453_v62 = vadd.f32 %v1452_v18, %v1384_v41 }
 0x234   :  { %1486 = vst.msk [vmem:[%s2544_s3 + $0x90] sm:$0xff] %vm1467_vm8, %v1453_v62 }
 0x235   :  { %v1316_v58 = vpop.f32.mrf.mxu2 }
 0x236   :  { %v1317_v5 = vadd.f32 %v1316_v58, %v1248_v28  ;;  %v1385_v0 = vpop.f32.mrf.mxu3 }
 0x237   :  { %v1250_v17 = vpop.f32.mrf.mxu1 }
 0x238   :  { %v1386_v50 = vadd.f32 %v1385_v0, %v1317_v5  ;;  %v1457_v10 = vpop.f32.mrf.mxu0  ;;  %v1251_v3 = vadd.f32 %v1250_v17, %v2374_v7 }
 0x23a   :  { %v1455_v15 = vadd.f32 %v1454_v45, %v1386_v50 }
 0x23c   :  { %1487 = vst.msk [vmem:[%s2544_s3 + $0x98] sm:$0xff] %vm1467_vm8, %v1455_v15 }
 0x23d   :  { %v1319_v48 = vpop.f32.mrf.mxu2 }
 0x23e   :  { %v1320_v35 = vadd.f32 %v1319_v48, %v1251_v3  ;;  %v1388_v6 = vpop.f32.mrf.mxu3 }
 0x23f   :  { %v1252_v57 = vpop.f32.mrf.mxu1 }
 0x240   :  { %v1389_v9 = vadd.f32 %v1388_v6, %v1320_v35  ;;  %v1253_v14 = vadd.f32 %v1252_v57, %v2381_v39  ;;  %v1459_v16 = vpop.f32.mrf.mxu0 }
 0x242   :  { %v1458_v32 = vadd.f32 %v1457_v10, %v1389_v9 }
 0x244   :  { %1488 = vst.msk [vmem:[%s2544_s3 + $0xa0] sm:$0xff] %vm1467_vm8, %v1458_v32 }
 0x245   :  { %v1321_v23 = vpop.f32.mrf.mxu2 }
 0x246   :  { %v1322_v2 = vadd.f32 %v1321_v23, %v1253_v14  ;;  %v1390_v54 = vpop.f32.mrf.mxu3 }
 0x247   :  { %v1255_v22 = vpop.f32.mrf.mxu1 }
 0x248   :  { %v1391_v49 = vadd.f32 %v1390_v54, %v1322_v2  ;;  %v1256_v29 = vadd.f32 %v1255_v22, %v2388_v27  ;;  %v1462_v37 = vpop.f32.mrf.mxu0 }
 0x24a   :  { %v1460_v7 = vadd.f32 %v1459_v16, %v1391_v49 }
 0x24c   :  { %1489 = vst.msk [vmem:[%s2544_s3 + $0xa8] sm:$0xff] %vm1467_vm8, %v1460_v7 }
 0x24d   :  { %v1324_v31 = vpop.f32.mrf.mxu2 }
 0x24e   :  { %v1325_v46 = vadd.f32 %v1324_v31, %v1256_v29  ;;  %v1393_v52 = vpop.f32.mrf.mxu3 }
 0x24f   :  { %v1257_v39 = vpop.f32.mrf.mxu1 }
 0x250   :  { %v1394_v63 = vadd.f32 %v1393_v52, %v1325_v46  ;;  %v1258_v12 = vadd.f32 %v1257_v39, %v2395_v26  ;;  %v1464_v25 = vpop.f32.mrf.mxu0 }
 0x252   :  { %v1463_v40 = vadd.f32 %v1462_v37, %v1394_v63 }
 0x254   :  { %1490 = vst.msk [vmem:[%s2544_s3 + $0xb0] sm:$0xff] %vm1467_vm8, %v1463_v40 }
 0x255   :  { %v1326_v42 = vpop.f32.mrf.mxu2 }
 0x256   :  { %v1327_v20 = vadd.f32 %v1326_v42, %v1258_v12  ;;  %v1395_v55 = vpop.f32.mrf.mxu3 }
 0x258   :  { %v1396_v36 = vadd.f32 %v1395_v55, %v1327_v20 }
 0x25a   :  { %v1465_v27 = vadd.f32 %v1464_v25, %v1396_v36 }
 0x25c   :  { %1491 = vst.msk [vmem:[%s2544_s3 + $0xb8] sm:$0xff] %vm1467_vm8, %v1465_v27 }
 0x25d   :  { %1496 = vsyncpa [#allocation3], 1 }

</bundles_post_ra>
